<compile_context>
chip_gen: v6e
topology: v6e:2x2x1
jax: 0.10.0
libtpu: 0.0.40
codegen_flags: <defaults>
</compile_context>

<pallas_src>
import functools

import jax
import jax.numpy as jnp
from jax import lax
from jax.experimental import pallas as pl
from jax.experimental.pallas import tpu as pltpu

_OUT_LANES = 128  # single packed output row: lane 0 = loss, lane 1 = acc


def _diffusion_fwd_kernel(x_ref, u_ref, beta_ref, temb_ref,
                          wf_ref, b1_ref, w2_ref, b2_ref,
                          out_ref,
                          loss_acc, correct_acc,
                          *, inv_total):
    step = pl.program_id(0)

    @pl.when(step == 0)
    def _init():
        loss_acc[...] = jnp.zeros_like(loss_acc)
        correct_acc[...] = jnp.zeros_like(correct_acc)

    # --- get_mask_torch + q_sample: Bernoulli(beta) mask, flip x where mask ---
    x = x_ref[...]                                            # (TM, D) binary 0/1 floats
    mask = (u_ref[...] < beta_ref[...]).astype(jnp.float32)   # (TM, D)
    x_t = jnp.abs(x - mask)                                   # flip_values on masked elems

    # --- denoiser MLP: single fused K=(D+H) matmul on the MXU (bf16 in, f32 acc) ---
    xin = jnp.concatenate([x_t, temb_ref[...]], axis=-1).astype(jnp.bfloat16)  # (TM, D+H)
    h = jnp.dot(xin, wf_ref[...], preferred_element_type=jnp.float32) + b1_ref[...]
    h = jnp.maximum(h, 0.0)                                   # ReLU (f32)
    pred = (jnp.dot(h.astype(jnp.bfloat16), w2_ref[...],
                    preferred_element_type=jnp.float32) + b2_ref[...])

    # --- F.binary_cross_entropy_with_logits(pred, mask.float()), running sum ---
    target = mask
    loss_el = (jnp.maximum(pred, 0.0) - pred * target
               + jnp.log1p(jnp.exp(-jnp.abs(pred))))
    loss_acc[...] += jnp.sum(loss_el, keepdims=True)          # (1, 1)

    # --- binary accuracy: sigmoid(pred) > 0.5  is exactly  pred > 0 ---
    pred_bin = (pred > 0.0).astype(jnp.float32)
    correct_acc[...] += jnp.sum((pred_bin == target).astype(jnp.float32),
                                keepdims=True)                # (1, 1)

    # --- finalize: normalize and pack both scalars into one lane-dense row ---
    @pl.when(step == pl.num_programs(0) - 1)
    def _finalize():
        lane = lax.broadcasted_iota(jnp.int32, (1, _OUT_LANES), 1)
        loss_mean = loss_acc[...] * inv_total                 # (1, 1)
        acc_mean = correct_acc[...] * inv_total               # (1, 1)
        out_ref[...] = jnp.where(lane == 0, loss_mean,
                                 jnp.where(lane == 1, acc_mean, 0.0))


def binary_diffusion_forward(x, u, beta, temb, w_fused, b1, w2, b2, *, block_m=128):
    """Returns (loss, acc) scalars for the 'mask' denoising target.

    x, u: (BS, D) f32; beta: (BS, 1) f32; temb: (BS, H) f32
    w_fused: (D+H, H) bf16 (= [w1; wt] stacked once in the caller)
    b1: (1, H) f32; w2: (H, D) bf16; b2: (1, D) f32
    """
    bs, d = x.shape
    h_dim = temb.shape[1]
    assert bs % block_m == 0, "batch must be a multiple of block_m"
    n_tiles = bs // block_m
    inv_total = 1.0 / float(bs * d)

    kernel = functools.partial(_diffusion_fwd_kernel, inv_total=inv_total)

    out = pl.pallas_call(
        kernel,
        out_shape=jax.ShapeDtypeStruct((1, _OUT_LANES), jnp.float32),
        grid=(n_tiles,),
        in_specs=[
            pl.BlockSpec((block_m, d), lambda i: (i, 0)),          # x tile
            pl.BlockSpec((block_m, d), lambda i: (i, 0)),          # uniforms tile
            pl.BlockSpec((block_m, 1), lambda i: (i, 0)),          # beta tile
            pl.BlockSpec((block_m, h_dim), lambda i: (i, 0)),      # time-embedding tile
            pl.BlockSpec((d + h_dim, h_dim), lambda i: (0, 0)),    # fused [w1; wt] (resident)
            pl.BlockSpec((1, h_dim), lambda i: (0, 0)),            # b1 (resident)
            pl.BlockSpec((h_dim, d), lambda i: (0, 0)),            # w2 (resident)
            pl.BlockSpec((1, d), lambda i: (0, 0)),                # b2 (resident)
        ],
        out_specs=pl.BlockSpec((1, _OUT_LANES), lambda i: (0, 0)),
        scratch_shapes=[pltpu.VMEM((1, 1), jnp.float32),           # running loss sum
                        pltpu.VMEM((1, 1), jnp.float32)],          # running correct count
        compiler_params=pltpu.CompilerParams(
            dimension_semantics=("arbitrary",)),  # batch axis is a reduction (accumulators)
    )(x, u, beta, temb, w_fused, b1, w2, b2)
    return out[0, 0], out[0, 1]


def _reference_forward(x, u, beta, temb, w_fused, b1, w2, b2):
    """Pure-JAX reference with identical bf16 matmul operands / f32 accumulation."""
    mask = (u < beta).astype(jnp.float32)
    x_t = jnp.abs(x - mask)
    xin = jnp.concatenate([x_t, temb], axis=-1).astype(jnp.bfloat16)
    h = jnp.maximum(jnp.dot(xin, w_fused, preferred_element_type=jnp.float32) + b1, 0.0)
    pred = jnp.dot(h.astype(jnp.bfloat16), w2, preferred_element_type=jnp.float32) + b2
    loss = jnp.mean(jnp.maximum(pred, 0.0) - pred * mask
                    + jnp.log1p(jnp.exp(-jnp.abs(pred))))
    acc = jnp.mean((((jax.nn.sigmoid(pred) > 0.5).astype(jnp.float32)) == mask)
                   .astype(jnp.float32))
    return loss, acc


def make_beta_schedule_linear(n_timesteps, start, end=0.5):
    return jnp.linspace(start, end, n_timesteps, dtype=jnp.float32)


if __name__ == "__main__":
    BS, D, H = 512, 128, 128        # data_dim = D (self.size), denoiser hidden = H
    N_TIMESTEPS = 16
    BLOCK_M = 128                   # batch tile rows per grid step

    key = jax.random.PRNGKey(0)
    (k_x, k_t, k_u, k_emb, k_w1, k_b1, k_wt, k_w2, k_b2) = jax.random.split(key, 9)

    # binary input data, shape (BS, data_dim)
    x = jax.random.bernoulli(k_x, 0.5, (BS, D)).astype(jnp.float32)

    # beta schedule: make_beta_schedule('linear', n_timesteps, start=1/size)
    betas = make_beta_schedule_linear(N_TIMESTEPS, start=1.0 / D)

    # random timesteps per sample, gathered betas (glue: gather in plain JAX)
    t = jax.random.randint(k_t, (BS,), 0, N_TIMESTEPS)
    beta = betas[t][:, None]                                  # (BS, 1)

    # uniforms for the Bernoulli noising mask (randomness generated in glue)
    u = jax.random.uniform(k_u, (BS, D), dtype=jnp.float32)

    # deterministic synthetic denoiser parameters (SimpleTableGenerator stand-in)
    temb_table = 0.1 * jax.random.normal(k_emb, (N_TIMESTEPS, H), dtype=jnp.float32)
    temb = temb_table[t]                                      # (BS, H) time embedding
    w1 = 0.05 * jax.random.normal(k_w1, (D, H), dtype=jnp.float32)
    b1 = 0.05 * jax.random.normal(k_b1, (1, H), dtype=jnp.float32)
    wt = 0.05 * jax.random.normal(k_wt, (H, H), dtype=jnp.float32)
    w2 = 0.05 * jax.random.normal(k_w2, (H, D), dtype=jnp.float32)
    b2 = 0.05 * jax.random.normal(k_b2, (1, D), dtype=jnp.float32)

    # Fuse the two hidden-layer weights ONCE (not per step) and cast matmul
    # operands to bf16; biases / elementwise math stay f32.
    w_fused = jnp.concatenate([w1, wt], axis=0).astype(jnp.bfloat16)   # (D+H, H)
    w2_bf16 = w2.astype(jnp.bfloat16)                                  # (H, D)

    loss, acc = binary_diffusion_forward(x, u, beta, temb, w_fused, b1, w2_bf16, b2,
                                         block_m=BLOCK_M)
    loss, acc = jax.block_until_ready((loss, acc))

    ref_loss, ref_acc = _reference_forward(x, u, beta, temb, w_fused, b1, w2_bf16, b2)
    assert jnp.allclose(loss, ref_loss, rtol=2e-3, atol=2e-3), (loss, ref_loss)
    assert jnp.allclose(acc, ref_acc, atol=2e-3), (acc, ref_acc)

    # TODO(synk): torch.randint / torchmetrics RNG streams cannot be bit-matched in JAX;
    # randomness is generated deterministically with jax.random in the wrapper instead.
    print("KERNEL_OK")
</pallas_src>

<mosaic_0001>
module attributes {stable_mosaic.version = 11 : i64} {
  func.func @_diffusion_fwd_kernel(%arg0: i32, %arg1: memref<128x128xf32, #tpu.memory_space<vmem>>, %arg2: memref<128x128xf32, #tpu.memory_space<vmem>>, %arg3: memref<128x1xf32, #tpu.memory_space<vmem>>, %arg4: memref<128x128xf32, #tpu.memory_space<vmem>>, %arg5: memref<256x128xbf16, #tpu.memory_space<vmem>>, %arg6: memref<1x128xf32, #tpu.memory_space<vmem>>, %arg7: memref<128x128xbf16, #tpu.memory_space<vmem>>, %arg8: memref<1x128xf32, #tpu.memory_space<vmem>>, %arg9: memref<1x128xf32, #tpu.memory_space<vmem>>, %arg10: memref<1x1xf32, #tpu.memory_space<vmem>>, %arg11: memref<1x1xf32, #tpu.memory_space<vmem>>) attributes {dimension_semantics = [#tpu.dimension_semantics<arbitrary>], iteration_bounds = array<i64: 4>, scalar_prefetch = 0 : i64, scratch_operands = 2 : i64, tpu.core_type = #tpu.core_type<tc>, window_params = [{transform_indices = @transform_0, window_bounds = array<i64: 128, 128>}, {transform_indices = @transform_1, window_bounds = array<i64: 128, 128>}, {transform_indices = @transform_2, window_bounds = array<i64: 128, 1>}, {transform_indices = @transform_3, window_bounds = array<i64: 128, 128>}, {pipeline_mode = #tpu.pipeline_mode<synchronous>, transform_indices = @transform_4, window_bounds = array<i64: 256, 128>}, {pipeline_mode = #tpu.pipeline_mode<synchronous>, transform_indices = @transform_5, window_bounds = array<i64: 1, 128>}, {pipeline_mode = #tpu.pipeline_mode<synchronous>, transform_indices = @transform_6, window_bounds = array<i64: 128, 128>}, {pipeline_mode = #tpu.pipeline_mode<synchronous>, transform_indices = @transform_7, window_bounds = array<i64: 1, 128>}, {pipeline_mode = #tpu.pipeline_mode<synchronous>, transform_indices = @transform_8, window_bounds = array<i64: 1, 128>}]} {
    %c0_i32 = arith.constant 0 : i32
    %0 = arith.cmpi eq, %arg0, %c0_i32 : i32
    %1 = arith.extui %0 : i1 to i32
    %c0_i32_0 = arith.constant 0 : i32
    %2 = arith.cmpi ne, %1, %c0_i32_0 : i32
    scf.if %2 {
      %cst_32 = arith.constant 0.000000e+00 : f32
      %64 = vector.broadcast %cst_32 : f32 to vector<1x1xf32>
      %c0_33 = arith.constant 0 : index
      %c0_34 = arith.constant 0 : index
      %65 = vector.load %arg10[%c0_33, %c0_34] : memref<1x1xf32, #tpu.memory_space<vmem>>, vector<1x1xf32>
      tpu.vector_store %arg10[%c0_33, %c0_34], %64 {strides = array<i32>} : memref<1x1xf32, #tpu.memory_space<vmem>>, vector<1x1xf32>,
      %cst_35 = arith.constant 0.000000e+00 : f32
      %66 = vector.broadcast %cst_35 : f32 to vector<1x1xf32>
      %c0_36 = arith.constant 0 : index
      %c0_37 = arith.constant 0 : index
      %67 = vector.load %arg11[%c0_36, %c0_37] : memref<1x1xf32, #tpu.memory_space<vmem>>, vector<1x1xf32>
      tpu.vector_store %arg11[%c0_36, %c0_37], %66 {strides = array<i32>} : memref<1x1xf32, #tpu.memory_space<vmem>>, vector<1x1xf32>,
    } else {
    }
    %c0 = arith.constant 0 : index
    %c0_1 = arith.constant 0 : index
    %3 = vector.load %arg1[%c0, %c0_1] : memref<128x128xf32, #tpu.memory_space<vmem>>, vector<128x128xf32>
    %c0_2 = arith.constant 0 : index
    %c0_3 = arith.constant 0 : index
    %4 = vector.load %arg2[%c0_2, %c0_3] : memref<128x128xf32, #tpu.memory_space<vmem>>, vector<128x128xf32>
    %c0_4 = arith.constant 0 : index
    %c0_5 = arith.constant 0 : index
    %5 = vector.load %arg3[%c0_4, %c0_5] : memref<128x1xf32, #tpu.memory_space<vmem>>, vector<128x1xf32>
    %6 = vector.broadcast %5 : vector<128x1xf32> to vector<128x128xf32>
    %7 = arith.cmpf olt, %4, %6 : vector<128x128xf32>
    %8 = arith.extui %7 : vector<128x128xi1> to vector<128x128xi32>
    %9 = arith.sitofp %8 : vector<128x128xi32> to vector<128x128xf32>
    %10 = arith.subf %3, %9 : vector<128x128xf32>
    %11 = math.absf %10 : vector<128x128xf32>
    %c0_6 = arith.constant 0 : index
    %c0_7 = arith.constant 0 : index
    %12 = vector.load %arg4[%c0_6, %c0_7] : memref<128x128xf32, #tpu.memory_space<vmem>>, vector<128x128xf32>
    %13 = tpu.concatenate %11, %12 in 1 : vector<128x128xf32>, vector<128x128xf32> -> vector<128x256xf32>
    %14 = arith.truncf %13 : vector<128x256xf32> to vector<128x256xbf16>
    %c0_8 = arith.constant 0 : index
    %c0_9 = arith.constant 0 : index
    %15 = vector.load %arg5[%c0_8, %c0_9] : memref<256x128xbf16, #tpu.memory_space<vmem>>, vector<256x128xbf16>
    %cst = arith.constant dense<0.000000e+00> : vector<128x128xf32>
    %16 = tpu.matmul %14, %15, %cst {dimension_numbers = #tpu.dot_dimension_numbers<[1], [0], [0], [1], [0, 0, 1, 1], [], []>} : vector<128x256xbf16>, vector<256x128xbf16>, vector<128x128xf32> -> vector<128x128xf32>
    %c0_10 = arith.constant 0 : index
    %c0_11 = arith.constant 0 : index
    %17 = vector.load %arg6[%c0_10, %c0_11] : memref<1x128xf32, #tpu.memory_space<vmem>>, vector<1x128xf32>
    %18 = vector.broadcast %17 : vector<1x128xf32> to vector<128x128xf32>
    %19 = arith.addf %16, %18 : vector<128x128xf32>
    %cst_12 = arith.constant 0.000000e+00 : f32
    %20 = vector.broadcast %cst_12 : f32 to vector<128x128xf32>
    %21 = arith.maximumf %19, %20 : vector<128x128xf32>
    %22 = arith.truncf %21 : vector<128x128xf32> to vector<128x128xbf16>
    %c0_13 = arith.constant 0 : index
    %c0_14 = arith.constant 0 : index
    %23 = vector.load %arg7[%c0_13, %c0_14] : memref<128x128xbf16, #tpu.memory_space<vmem>>, vector<128x128xbf16>
    %cst_15 = arith.constant dense<0.000000e+00> : vector<128x128xf32>
    %24 = tpu.matmul %22, %23, %cst_15 {dimension_numbers = #tpu.dot_dimension_numbers<[1], [0], [0], [1], [0, 0, 1, 1], [], []>} : vector<128x128xbf16>, vector<128x128xbf16>, vector<128x128xf32> -> vector<128x128xf32>
    %c0_16 = arith.constant 0 : index
    %c0_17 = arith.constant 0 : index
    %25 = vector.load %arg8[%c0_16, %c0_17] : memref<1x128xf32, #tpu.memory_space<vmem>>, vector<1x128xf32>
    %26 = vector.broadcast %25 : vector<1x128xf32> to vector<128x128xf32>
    %27 = arith.addf %24, %26 : vector<128x128xf32>
    %cst_18 = arith.constant 0.000000e+00 : f32
    %28 = vector.broadcast %cst_18 : f32 to vector<128x128xf32>
    %29 = arith.maximumf %27, %28 : vector<128x128xf32>
    %30 = arith.mulf %27, %9 : vector<128x128xf32>
    %31 = arith.subf %29, %30 : vector<128x128xf32>
    %32 = math.absf %27 : vector<128x128xf32>
    %cst_19 = arith.constant 0.000000e+00 : f32
    %33 = vector.broadcast %cst_19 : f32 to vector<128x128xf32>
    %34 = arith.subf %33, %32 : vector<128x128xf32>
    %35 = math.exp %34 : vector<128x128xf32>
    %36 = math.log1p %35 : vector<128x128xf32>
    %37 = arith.addf %31, %36 : vector<128x128xf32>
    %c0_20 = arith.constant 0 : index
    %c0_21 = arith.constant 0 : index
    %38 = vector.load %arg10[%c0_20, %c0_21] : memref<1x1xf32, #tpu.memory_space<vmem>>, vector<1x1xf32>
    %39 = vector.shape_cast %37 : vector<128x128xf32> to vector<1x128x128xf32>
    %cst_22 = arith.constant dense<0.000000e+00> : vector<1xf32>
    %40 = vector.multi_reduction <add>, %39, %cst_22 [1, 2] : vector<1x128x128xf32> to vector<1xf32>
    %41 = vector.shape_cast %40 : vector<1xf32> to vector<1x1x1xf32>
    %42 = vector.extract %41[0, 0, 0] : f32 from vector<1x1x1xf32>
    %43 = vector.broadcast %42 : f32 to vector<1x1xf32>
    %44 = arith.addf %38, %43 : vector<1x1xf32>
    %c0_23 = arith.constant 0 : index
    %c0_24 = arith.constant 0 : index
    %45 = vector.load %arg10[%c0_23, %c0_24] : memref<1x1xf32, #tpu.memory_space<vmem>>, vector<1x1xf32>
    tpu.vector_store %arg10[%c0_23, %c0_24], %44 {strides = array<i32>} : memref<1x1xf32, #tpu.memory_space<vmem>>, vector<1x1xf32>,
    %cst_25 = arith.constant 0.000000e+00 : f32
    %46 = vector.broadcast %cst_25 : f32 to vector<128x128xf32>
    %47 = arith.cmpf ogt, %27, %46 : vector<128x128xf32>
    %48 = arith.extui %47 : vector<128x128xi1> to vector<128x128xi32>
    %49 = arith.sitofp %48 : vector<128x128xi32> to vector<128x128xf32>
    %c0_26 = arith.constant 0 : index
    %c0_27 = arith.constant 0 : index
    %50 = vector.load %arg11[%c0_26, %c0_27] : memref<1x1xf32, #tpu.memory_space<vmem>>, vector<1x1xf32>
    %51 = arith.cmpf oeq, %49, %9 : vector<128x128xf32>
    %52 = arith.extui %51 : vector<128x128xi1> to vector<128x128xi32>
    %53 = arith.sitofp %52 : vector<128x128xi32> to vector<128x128xf32>
    %54 = vector.shape_cast %53 : vector<128x128xf32> to vector<1x128x128xf32>
    %cst_28 = arith.constant dense<0.000000e+00> : vector<1xf32>
    %55 = vector.multi_reduction <add>, %54, %cst_28 [1, 2] : vector<1x128x128xf32> to vector<1xf32>
    %56 = vector.shape_cast %55 : vector<1xf32> to vector<1x1x1xf32>
    %57 = vector.extract %56[0, 0, 0] : f32 from vector<1x1x1xf32>
    %58 = vector.broadcast %57 : f32 to vector<1x1xf32>
    %59 = arith.addf %50, %58 : vector<1x1xf32>
    %c0_29 = arith.constant 0 : index
    %c0_30 = arith.constant 0 : index
    %60 = vector.load %arg11[%c0_29, %c0_30] : memref<1x1xf32, #tpu.memory_space<vmem>>, vector<1x1xf32>
    tpu.vector_store %arg11[%c0_29, %c0_30], %59 {strides = array<i32>} : memref<1x1xf32, #tpu.memory_space<vmem>>, vector<1x1xf32>,
    %c3_i32 = arith.constant 3 : i32
    %61 = arith.cmpi eq, %arg0, %c3_i32 : i32
    %62 = arith.extui %61 : i1 to i32
    %c0_i32_31 = arith.constant 0 : i32
    %63 = arith.cmpi ne, %62, %c0_i32_31 : i32
    scf.if %63 {
      %64 = tpu.iota {dimensions = array<i32: 1>} : vector<1x128xi32>
      %c0_32 = arith.constant 0 : index
      %c0_33 = arith.constant 0 : index
      %65 = vector.load %arg10[%c0_32, %c0_33] : memref<1x1xf32, #tpu.memory_space<vmem>>, vector<1x1xf32>
      %cst_34 = arith.constant 1.52587891E-5 : f32
      %66 = vector.broadcast %cst_34 : f32 to vector<1x1xf32>
      %67 = arith.mulf %65, %66 : vector<1x1xf32>
      %c0_35 = arith.constant 0 : index
      %c0_36 = arith.constant 0 : index
      %68 = vector.load %arg11[%c0_35, %c0_36] : memref<1x1xf32, #tpu.memory_space<vmem>>, vector<1x1xf32>
      %cst_37 = arith.constant 1.52587891E-5 : f32
      %69 = vector.broadcast %cst_37 : f32 to vector<1x1xf32>
      %70 = arith.mulf %68, %69 : vector<1x1xf32>
      %c0_i32_38 = arith.constant 0 : i32
      %71 = vector.broadcast %c0_i32_38 : i32 to vector<1x128xi32>
      %72 = arith.cmpi eq, %64, %71 : vector<1x128xi32>
      %c1_i32 = arith.constant 1 : i32
      %73 = vector.broadcast %c1_i32 : i32 to vector<1x128xi32>
      %74 = arith.cmpi eq, %64, %73 : vector<1x128xi32>
      %cst_39 = arith.constant 0.000000e+00 : f32
      %75 = vector.shape_cast %70 : vector<1x1xf32> to vector<1x1xf32>
      %76 = vector.broadcast %75 : vector<1x1xf32> to vector<1x128xf32>
      %77 = vector.broadcast %cst_39 : f32 to vector<1x128xf32>
      %78 = arith.select %74, %76, %77 : vector<1x128xi1>, vector<1x128xf32>
      %79 = vector.shape_cast %67 : vector<1x1xf32> to vector<1x1xf32>
      %80 = vector.broadcast %79 : vector<1x1xf32> to vector<1x128xf32>
      %81 = arith.select %72, %80, %78 : vector<1x128xi1>, vector<1x128xf32>
      %c0_40 = arith.constant 0 : index
      %c0_41 = arith.constant 0 : index
      %82 = vector.load %arg9[%c0_40, %c0_41] : memref<1x128xf32, #tpu.memory_space<vmem>>, vector<1x128xf32>
      tpu.vector_store %arg9[%c0_40, %c0_41], %81 {strides = array<i32>} : memref<1x128xf32, #tpu.memory_space<vmem>>, vector<1x128xf32>,
    } else {
    }
    return
  }
  func.func @transform_0(%arg0: i32) -> (i32, i32) {
    %c0_i32 = arith.constant 0 : i32
    %c0_i32_0 = arith.constant 0 : i32
    return %arg0, %c0_i32 : i32, i32
  }
  func.func @transform_1(%arg0: i32) -> (i32, i32) {
    %c0_i32 = arith.constant 0 : i32
    %c0_i32_0 = arith.constant 0 : i32
    return %arg0, %c0_i32 : i32, i32
  }
  func.func @transform_2(%arg0: i32) -> (i32, i32) {
    %c0_i32 = arith.constant 0 : i32
    %c0_i32_0 = arith.constant 0 : i32
    return %arg0, %c0_i32 : i32, i32
  }
  func.func @transform_3(%arg0: i32) -> (i32, i32) {
    %c0_i32 = arith.constant 0 : i32
    %c0_i32_0 = arith.constant 0 : i32
    return %arg0, %c0_i32 : i32, i32
  }
  func.func @transform_4(%arg0: i32) -> (i32, i32) {
    %c0_i32 = arith.constant 0 : i32
    %c0_i32_0 = arith.constant 0 : i32
    %c0_i32_1 = arith.constant 0 : i32
    return %c0_i32, %c0_i32_0 : i32, i32
  }
  func.func @transform_5(%arg0: i32) -> (i32, i32) {
    %c0_i32 = arith.constant 0 : i32
    %c0_i32_0 = arith.constant 0 : i32
    %c0_i32_1 = arith.constant 0 : i32
    return %c0_i32, %c0_i32_0 : i32, i32
  }
  func.func @transform_6(%arg0: i32) -> (i32, i32) {
    %c0_i32 = arith.constant 0 : i32
    %c0_i32_0 = arith.constant 0 : i32
    %c0_i32_1 = arith.constant 0 : i32
    return %c0_i32, %c0_i32_0 : i32, i32
  }
  func.func @transform_7(%arg0: i32) -> (i32, i32) {
    %c0_i32 = arith.constant 0 : i32
    %c0_i32_0 = arith.constant 0 : i32
    %c0_i32_1 = arith.constant 0 : i32
    return %c0_i32, %c0_i32_0 : i32, i32
  }
  func.func @transform_8(%arg0: i32) -> (i32, i32) {
    %c0_i32 = arith.constant 0 : i32
    %c0_i32_0 = arith.constant 0 : i32
    %c0_i32_1 = arith.constant 0 : i32
    return %c0_i32, %c0_i32_0 : i32, i32
  }
}

</mosaic_0001>

<bundles_post_ra>
// kernel: tpu_custom_call.1
= control target key start
LH: loop header
LB: loop body
LE: loop exit
PB: predicated region body
PF: predicated region fallthrough
CT: control target
= control target key end

     0   :  { %s3089_s0 = inlined_call_operand.vmem [shape: f32[512,128], index: 0, kind: input, shape index: {}]   ;;  %s3090_s1 = inlined_call_operand.hbm [shape: f32[512,128], index: 1, kind: input, shape index: {}]   ;;  %s3091_s2 = inlined_call_operand.vmem [shape: f32[512,1], index: 2, kind: input, shape index: {}]   ;;  %s3092_s3 = inlined_call_operand.hbm [shape: f32[512,128], index: 3, kind: input, shape index: {}]   ;;  %s3093_s4 = inlined_call_operand.hbm [shape: bf16[256,128], index: 4, kind: input, shape index: {}]   ;;  %s3094_s5 = inlined_call_operand.vmem [shape: f32[1,128], index: 5, kind: input, shape index: {}]   ;;  %s3095_s6 = inlined_call_operand.hbm [shape: bf16[128,128], index: 6, kind: input, shape index: {}]   ;;  %s3096_s7 = inlined_call_operand.vmem [shape: f32[1,128], index: 7, kind: input, shape index: {}]   ;;  %s3097_s8 = inlined_call_operand.hbm [shape: f32[1,128], index: 8, kind: output, shape index: {}]  }
   0x1   :  { %3100 = sst [smem:[#allocation18_spill]] %s3090_s1 }
   0x2   :  { %3101 = sst [smem:[#allocation19_spill]] %s3093_s4 }
   0x3   :  { %13 = vsyncpa [#allocation5], 0 }
   0x4   :  { %15 = vsyncpa [#allocation5 + $0x1], 0 }
   0x5   :  { %16 = vsyncpa [#allocation8], 0 }
   0x6   :  { %18 = vsyncpa [#allocation8 + $0x1], 0 }
   0x7   :  { %19 = vsyncpa [#allocation11], 0 }
   0x8   :  { %20 = vsyncpa [#allocation6], 0  ;;  %s2311_s27 = smov 0   ;;  %s2313_s28 = smov 0  }
   0x9   :  { %s2315_s29 = smov 0   ;;  %s2317_s30 = smov 0  }
   0xa LB: > { %s2330_s9 = sadd.s32 4294967295, %s2251_s30   ;;  %p72_p0 = scmp.ne.s32.totalorder %s2243_s28, %s2239_s27  ;;  %s2251_s30 = sphi %s2317_s30, %s3139_s30   ;;  %s2247_s29 = sphi %s2315_s29, %s3138_s29   ;;  %s2243_s28 = sphi %s2313_s28, %s3137_s28   ;;  %s2239_s27 = sphi %s2311_s27, %s3136_s27  }
   0xb   : > { %p3098_p1 = scmp.eq.s32.totalorder %s2330_s9, 0  ;;  %p1681_p2 = scmp.ge.s32.totalorder %s2251_s30, 1 }
   0xc   : > { %p240_p3 = scmp.lt.s32.totalorder %s2251_s30, 5  ;;  %s2253_s12 = smov [#allocation9]  }
   0xd   : > { %p2339_p5 = por %p3098_p1, %p72_p0  ;;  %s252_s13 = sshll.u32 %s2253_s12, 4  ;;  %s253_s13 = int_to_ptr.vmem [resolvable:$true] %s252_s13 }
   0xe   : > { %p2343_p6 = pnand %p1681_p2, %p240_p3  ;;  %s2254_s15 = smov [#allocation10]  }
   0xf   : > { %s3102_s10 = scalar_select %p2339_p5, 1, 0 }
  0x10   : > { %p1914_p7 = pneg %p2343_p6  ;;  %s268_s16 = sshll.u32 %s2254_s15, 4  ;;  %s269_s16 = int_to_ptr.vmem [resolvable:$true] %s268_s16 }
  0x11   : > { %s2080_s17 = scalar_lea.vmem %s253_s13, 2048  ;;  %p2088_p13 = scmp.lt.s32.totalorder %s253_s13, %s253_s13 }
  0x12   : > { %p2351_p8 = pnand %p1914_p7, %p3098_p1  ;;  %p2081_p10 = scmp.ne.s32.totalorder %s253_s13, %s2080_s17 }
  0x13   : > { %p2089_p0 = scmp.lt.s32.totalorder %s2080_s17, %s2080_s17 }
  0x14   : > { %p2071_p9 = pneg %p2351_p8 }
  0x15   : > { %p2090_p2 = por %p2089_p0, %p2088_p13 }
  0x16   : > { %p2083_p11 = pnand %p2081_p10, %p2071_p9 }
  0x18   : > { %p2084_p12 = pneg %p2083_p11 }
  0x1a   : > { %p2091_p3 = pnand %p2090_p2, %p2084_p12 }
  0x1c   : > { %2094 = shalt.err (!%p2091_p3)
}
  0x1d   : > { %s2255_s18 = smov 64   ;;  %s2256_s19 = smov 4  }
  0x1e   : > { %s3105_s4 = sld [smem:[#allocation19_spill]]  ;;  %s2106_s22 = scalar_lea.vmem %s269_s16, 1024 }
  0x1f   : > { %p2107_p7 = scmp.ne.s32.totalorder %s269_s16, %s2106_s22  ;;  %p2114_p4 = scmp.lt.s32.totalorder %s269_s16, %s269_s16 }
  0x20   : > { %p2115_p1 = scmp.lt.s32.totalorder %s2106_s22, %s2106_s22 }
  0x21   : > { %p2109_p10 = pnand %p2107_p7, %p2071_p9 }
  0x22   : > { %p2116_p13 = por %p2115_p1, %p2114_p4 }
  0x23   : > { %p2110_p11 = pneg %p2109_p10 }
  0x24   : > { %1917 = dma.hbm_to_vmem [thread:$0]  (!%p2351_p8), %s3105_s4, 2048, %s253_s13, [#allocation8], %s2255_s18, %s2255_s18, %s2256_s19  }
  0x25   : > { %p2117_p12 = pnand %p2116_p13, %p2110_p11 }
  0x27   : > { %2120 = shalt.err (!%p2117_p12)
}
  0x28   : > { %1920 = dma.hbm_to_vmem [thread:$0]  (!%p2351_p8), %s3095_s6, 1024, %s269_s16, [#allocation11], %s2255_s18, %s2255_s18, %s2256_s19  }
  0x29   : > { %s2374_s25 = sadd.s32 1, %s2251_s30   ;;  %s59_s26 = sadd.s32 1, %s2247_s29 }
  0x2a   : > { %s56_s27 = ssub.s32 %s2251_s30, %s2374_s25  ;;  %p66_p1 = scmp.ne.s32.totalorder %s2247_s29, %s2243_s28 }
  0x2b   : > { %p57_p4 = scmp.eq.s32.totalorder %s56_s27, 0  ;;  %p67_p9 = scmp.eq.s32.totalorder %s2251_s30, 0 }
  0x2c   : > { %p1930_p0 = scmp.lt.s32.totalorder %s2251_s30, 4  ;;  %s294_s12 = sand.u32 1, %s2247_s29  }
  0x2d   : > { %s2385_s13 = scalar_select %p57_p4, %s2247_s29, %s59_s26  }
  0x2e   : > { %p68_p2 = por %p67_p9, %p66_p1  ;;  %s2387_s14 = sshll.u32 %s294_s12, 7 }
  0x2f   : > { %s1780_s15 = sshll.u32 %s2251_s30, 11  ;;  %s3106_s1 = sld [smem:[#allocation18_spill]] }
  0x30   : > { %s298_s19 = scalar_lea.vmem [#allocation4], %s2387_s14  ;;  %p2398_p8 = pnand %p1930_p0, %p68_p2 }
  0x31   : > { %s305_s20 = sshll.u32 %s298_s19, 4  ;;  %s2404_s22 = scalar_lea.sflag [#allocation5], %s294_s12  ;;  %s2402_s20 = int_to_ptr.vmem [resolvable:$true] %s305_s20 }
  0x32   : > { %p2123_p7 = pneg %p2398_p8 }
  0x35   : > { %s2395_s18 = scalar_lea.hbm %s3106_s1, %s1780_s15  ;;  %s2126_s27 = scalar_lea.hbm %s3106_s1, 8192 }
  0x36   : > { %s2121_s23 = scalar_lea.hbm %s2395_s18, 2048  ;;  %p2127_p13 = scmp.lt.s32.totalorder %s2395_s18, %s3106_s1 }
  0x37   : > { %p2122_p3 = scmp.ne.s32.totalorder %s2395_s18, %s2121_s23  ;;  %p2128_p12 = scmp.lt.s32.totalorder %s2126_s27, %s2121_s23 }
  0x39   : > { %p2124_p10 = pnand %p2123_p7, %p2122_p3  ;;  %p2129_p1 = por %p2128_p12, %p2127_p13 }
  0x3b   : > { %p2125_p11 = pneg %p2124_p10 }
  0x3d   : > { %p2130_p4 = pnand %p2129_p1, %p2125_p11 }
  0x3f   : > { %2133 = shalt.err (!%p2130_p4)
}
  0x40   : > { %s2134_s12 = scalar_lea.vmem %s2402_s20, 2048  ;;  %s2257_s19 = smov [#allocation4]  }
  0x41   : > { %p2135_p9 = scmp.ne.s32.totalorder %s2402_s20, %s2134_s12  ;;  %s2139_s24 = sshll.u32 %s2257_s19, 4  ;;  %s2140_s24 = int_to_ptr.vmem [resolvable:$false] %s2139_s24 }
  0x42   : > { %s2141_s26 = scalar_lea.vmem %s2140_s24, 4096  ;;  %p2142_p3 = scmp.lt.s32.totalorder %s2402_s20, %s2140_s24 }
  0x43   : > { %p2137_p0 = pnand %p2135_p9, %p2123_p7  ;;  %p2143_p10 = scmp.lt.s32.totalorder %s2141_s26, %s2134_s12 }
  0x45   : > { %p2138_p2 = pneg %p2137_p0  ;;  %p2144_p5 = por %p2143_p10, %p2142_p3 }
  0x47   : > { %p2145_p13 = pnand %p2144_p5, %p2138_p2 }
  0x49   : > { %2148 = shalt.err (!%p2145_p13)
}
  0x4a   : > { %s2258_s23 = smov 128   ;;  %s2259_s27 = smov 8  }
  0x4b   : > { %1924 = dma.hbm_to_vmem [thread:$0]  (!%p2398_p8), %s2395_s18, 2048, %s2402_s20, %s2404_s22, %s2258_s23, %s2258_s23, %s2259_s27  }
  0x4c   : > { %s2439_s12 = scalar_lea.hbm %s3092_s3, %s1780_s15  ;;  %s328_s19 = scalar_lea.vmem [#allocation7], %s2387_s14 }
  0x4d   : > { %s335_s24 = sshll.u32 %s328_s19, 4  ;;  %s324_s26 = sand.u32 1, %s2251_s30   ;;  %s2443_s24 = int_to_ptr.vmem [resolvable:$true] %s335_s24 }
  0x4e   : > { %s325_s1 = scalar_lea.sflag [#allocation8], %s324_s26  ;;  %s2149_s4 = scalar_lea.hbm %s2439_s12, 2048 }
  0x4f   : > { %p2150_p5 = scmp.ne.s32.totalorder %s2439_s12, %s2149_s4  ;;  %s2154_s15 = scalar_lea.hbm %s3092_s3, 8192 }
  0x50   : > { %p2155_p1 = scmp.lt.s32.totalorder %s2439_s12, %s3092_s3  ;;  %p2156_p4 = scmp.lt.s32.totalorder %s2154_s15, %s2149_s4 }
  0x51   : > { %p2152_p11 = pnand %p2150_p5, %p2123_p7 }
  0x52   : > { %p2157_p9 = por %p2156_p4, %p2155_p1 }
  0x53   : > { %p2153_p12 = pneg %p2152_p11 }
  0x55   : > { %p2158_p0 = pnand %p2157_p9, %p2153_p12 }
  0x57   : > { %2161 = shalt.err (!%p2158_p0)
}
  0x58   : > { %s2162_s30 = scalar_lea.vmem %s2443_s24, 2048  ;;  %s2260_s14 = smov [#allocation7]  }
  0x59   : > { %p2163_p2 = scmp.ne.s32.totalorder %s2443_s24, %s2162_s30  ;;  %s2167_s16 = sshll.u32 %s2260_s14, 4  ;;  %s2168_s16 = int_to_ptr.vmem [resolvable:$false] %s2167_s16 }
  0x5a   : > { %s2169_s19 = scalar_lea.vmem %s2168_s16, 4096  ;;  %p2170_p13 = scmp.lt.s32.totalorder %s2443_s24, %s2168_s16 }
  0x5b   : > { %p2165_p3 = pnand %p2163_p2, %p2123_p7  ;;  %p2171_p5 = scmp.lt.s32.totalorder %s2169_s19, %s2162_s30 }
  0x5d   : > { %p2166_p10 = pneg %p2165_p3  ;;  %p2172_p11 = por %p2171_p5, %p2170_p13 }
  0x5f   : > { %p2173_p1 = pnand %p2172_p11, %p2166_p10 }
  0x61   : > { %2176 = shalt.err (!%p2173_p1)
}
  0x62   : > { %1927 = dma.hbm_to_vmem [thread:$0]  (!%p2398_p8), %s2439_s12, 2048, %s2443_s24, %s325_s1, %s2258_s23, %s2258_s23, %s2259_s27  }
  0x63   : > { %347 = sbr.rel (%p2343_p6) target bundleno = 1137 (0x471), region = 52  ;;  %s349_s4 = sand.u32 (!%p2343_p6), 1, %s2243_s28  }
  0x64   : > { %s1692_s26 = sshll.u32 (!%p2343_p6), %s349_s4, 7  ;;  %s350_s18 = scalar_lea.sflag (!%p2343_p6), [#allocation5], %s349_s4 }
  0x65   : > { %s2473_s20 = scalar_lea.vmem (!%p2343_p6), [#allocation4], %s1692_s26  ;;  %p3108_p7 = scmp.ne.s32.totalorder (!%p2343_p6), %s3102_s10, 0 }
  0x68   : > { %2218 = dma.done.wait (%p3108_p7), %s350_s18, 2048  }
  0x69   : > { %2220 = vsyncadd (%p3108_p7), %s350_s18, 4294965248  ;;  %s358_s21 = sand.u32 1, %s2330_s9   ;;  %s2480_s1 = scalar_lea.vmem [#allocation7], %s1692_s26 }
  0x6a   : > { %s359_s15 = scalar_lea.sflag [#allocation8], %s358_s21 }
  0x6b   : > { %2222 = dma.done.wait (%p3108_p7), %s359_s15, 2048  }
  0x6c   : > { %2224 = vsyncadd (%p3108_p7), %s359_s15, 4294965248  ;;  %p3109_p6 = scmp.eq.s32.totalorder %s2330_s9, 0 }
  0x6e   : > { %2226 = dma.done.wait (%p3109_p6), [#allocation8], 2048   ;;  %p3110_p8 = pmov %p3109_p6 }
  0x6f   : > { %p3111_p12 = pmov %p3109_p6 }
  0x70   : > { %2228 = vsyncadd (%p3110_p8), [#allocation8], 4294965248 }
  0x71   : > { %2230 = dma.done.wait (%p3111_p12), [#allocation11], 1024   ;;  %p3112_p4 = pmov %p3109_p6 }
  0x72   : > { %s1696_s11 = sshll.u32 %s2330_s9, 4  ;;  %p3113_p0 = scmp.ne.s32.totalorder %s2330_s9, 0 }
  0x73   : > { %2232 = vsyncadd (%p3112_p4), [#allocation11], 4294966272  ;;  %p414_p9 = scmp.lt.s32.totalorder %s1696_s11, 63 }
  0x74   : > { %431 = sbr.rel (%p3113_p0) target bundleno = 123 (0x7b), region = 72 }
  0x75   : > { %s3141_s11 = smov (!%p414_p9, %s1696_s11), 63 }
  0x76   : > { %s1697_s23 = sshll.u32 %s3141_s11, 3 }
  0x77   : > { %s2498_s12 = scalar_lea.vmem %s3089_s0, %s1697_s23  ;;  %s2503_s17 = scalar_lea.vmem %s3091_s2, %s1697_s23 }
  0x79   : > { %vm432_vm0 = vcmask 0   ;;  %v2261_v0 = vmov 0.0  }
  0x7a   : > { %433 = vst.msk [vmem:[#allocation2] sm:$0x1] %vm432_vm0, %v2261_v0  ;;  %434 = vst.msk [vmem:[#allocation3] sm:$0x1] %vm432_vm0, %v2261_v0 }
  0x7b PF: > { %v469_v1 = vld [vmem:[%s2503_s17 + $0x10] sm:$0xff]  ;;  %v467_v2 = vld [vmem:[%s2503_s17] sm:$0xff]  ;;  %v2262_v3 = vmov 0   ;;  %v470_v4 = vld [vmem:[%s2503_s17 + $0x18] sm:$0xff]  ;;  %v2263_v45 = vmov 0.0   ;;  %p1775_p2 = scmp.ne.s32.totalorder %s2330_s9, 3 }
  0x7c   : > { %1979 = vset.pattern.permute.xlu1 %v2262_v3  ;;  %1978 = vset.pattern.permute.xlu0 %v2262_v3  ;;  %v468_v5 = vld [vmem:[%s2503_s17 + $0x8] sm:$0xff]  ;;  %v471_v7 = vld [vmem:[%s2503_s17 + $0x20] sm:$0xff]  ;;  %v1982_v10 = vld [vmem:[#allocation9 + $0x70] sm:$0xff]  }
  0x7d   : > { %495 = vperm.xlu1 %1979, %v469_v1   ;;  %485 = vperm.xlu0 %1978, %v467_v2   ;;  %v472_v6 = vld [vmem:[%s2503_s17 + $0x28] sm:$0xff]  ;;  %v1980_v8 = vld [vmem:[#allocation9 + $0x78] sm:$0xff]   ;;  %v1983_v12 = vld [vmem:[#allocation9 + $0x30] sm:$0xff]  }
  0x7e   : > { %v1981_v9 = vld [vmem:[#allocation9 + $0x38] sm:$0xff]   ;;  %1782 = vmatprep.subr.bf16.mxu0 %v1980_v8  ;;  %v473_v13 = vld [vmem:[%s2503_s17 + $0x30] sm:$0xff]  ;;  %v476_v16 = vld [vmem:[%s2503_s17 + $0x48] sm:$0xff] }
  0x7f   : > { %v474_v11 = vld [vmem:[%s2503_s17 + $0x38] sm:$0xff]  ;;  %1783 = vmatpush3.bf16.msra.mxu0 %v1981_v9  ;;  %v1984_v14 = vld [vmem:[#allocation9 + $0x68] sm:$0xff]   ;;  %v475_v17 = vld [vmem:[%s2503_s17 + $0x40] sm:$0xff] }
  0x80   : > { %1784 = vmatprep.subr.bf16.mxu0 %v1982_v10  ;;  %v1985_v15 = vld [vmem:[#allocation9 + $0x28] sm:$0xff]   ;;  %v1986_v18 = vld [vmem:[#allocation9 + $0x60] sm:$0xff]   ;;  %v478_v20 = vld [vmem:[%s2503_s17 + $0x58] sm:$0xff] }
  0x81   : > { %500 = vperm.xlu1 %1979, %v470_v4   ;;  %490 = vperm.xlu0 %1978, %v468_v5   ;;  %v1987_v19 = vld [vmem:[#allocation9 + $0x20] sm:$0xff]   ;;  %v477_v21 = vld [vmem:[%s2503_s17 + $0x50] sm:$0xff]  ;;  %v1988_v22 = vld [vmem:[#allocation9 + $0x58] sm:$0xff]  }
  0x82   : > { %v1989_v23 = vld [vmem:[#allocation9 + $0x18] sm:$0xff]   ;;  %v480_v24 = vld [vmem:[%s2503_s17 + $0x68] sm:$0xff]  ;;  %v1990_v26 = vld [vmem:[#allocation9 + $0x50] sm:$0xff]  }
  0x83   : > { %1785 = vmatpush3.bf16.msra.mxu0 %v1983_v12  ;;  %v479_v25 = vld [vmem:[%s2503_s17 + $0x60] sm:$0xff]  ;;  %v1991_v27 = vld [vmem:[#allocation9 + $0x10] sm:$0xff]   ;;  %v644_v29 = vld [vmem:[%s2480_s1 + $0x8] sm:$0xff] }
  0x84   : > { %1786 = vmatprep.subr.bf16.mxu0 %v1984_v14  ;;  %v643_v28 = vld [vmem:[%s2480_s1] sm:$0xff]  ;;  %v482_v31 = vld [vmem:[%s2503_s17 + $0x78] sm:$0xff]  ;;  %v481_v32 = vld [vmem:[%s2503_s17 + $0x70] sm:$0xff] }
  0x85   : > { %510 = vperm.xlu1 %1979, %v472_v6   ;;  %505 = vperm.xlu0 %1978, %v471_v7   ;;  %v660_v30 = vpack.c.bf16 %v644_v29, %v643_v28  ;;  %v1992_v33 = vld [vmem:[#allocation9 + $0x48] sm:$0xff]   ;;  %v1994_v35 = vld [vmem:[#allocation9 + $0x40] sm:$0xff]   ;;  %v1996_v37 = vld [vmem:[#allocation10 + $0x38] sm:$0xff]  }
  0x86   : > { %v1993_v34 = vld [vmem:[#allocation9 + $0x8] sm:$0xff]   ;;  %v1995_v36 = vld [vmem:[#allocation9] sm:$0xff]   ;;  %v1997_v38 = vld [vmem:[#allocation10 + $0x30] sm:$0xff]   ;;  %1862 = vmatprep.subr.bf16.mxu1 %v1996_v37 }
  0x87   : > { %1787 = vmatpush3.bf16.msra.mxu0 %v1985_v15  ;;  %842 = vmatprep.mubr.bf16.mxu0 %v660_v30  ;;  %v1998_v39 = vld [vmem:[#allocation10 + $0x28] sm:$0xff]   ;;  %v451_v40 = vld [vmem:[%s2473_s20] sm:$0xff]  ;;  %v453_v43 = vld [vmem:[%s2473_s20 + $0x10] sm:$0xff] }
  0x88   : > { %1788 = vmatprep.subr.bf16.mxu0 %v1986_v18  ;;  %1863 = vmatpush3.bf16.msra.mxu1 %v1996_v37  ;;  %v435_v44 = vld [vmem:[%s2498_s12] sm:$0xff]  ;;  %v452_v48 = vld [vmem:[%s2473_s20 + $0x8] sm:$0xff]  ;;  %v645_v55 = vld [vmem:[%s2480_s1 + $0x10] sm:$0xff] }
  0x89   : > { %520 = vperm.xlu1 %1979, %v474_v11   ;;  %515 = vperm.xlu0 %1978, %v473_v13   ;;  %v454_v47 = vld [vmem:[%s2473_s20 + $0x18] sm:$0xff]  ;;  %v436_v51 = vld [vmem:[%s2498_s12 + $0x8] sm:$0xff]  ;;  %v437_v57 = vld [vmem:[%s2498_s12 + $0x10] sm:$0xff] }
  0x8a   : > { %1864 = vmatprep.subr.bf16.mxu1 %v1997_v38  ;;  %v646_v56 = vld [vmem:[%s2480_s1 + $0x18] sm:$0xff]  ;;  %v456_v0 = vld [vmem:[%s2473_s20 + $0x28] sm:$0xff]  ;;  %v455_v2 = vld [vmem:[%s2473_s20 + $0x20] sm:$0xff] }
  0x8b   : > { %1789 = vmatpush3.bf16.msra.mxu0 %v1987_v19  ;;  %v438_v59 = vld [vmem:[%s2498_s12 + $0x18] sm:$0xff]  ;;  %v662_v3 = vpack.c.bf16 %v646_v56, %v645_v55  ;;  %v647_v9 = vld [vmem:[%s2480_s1 + $0x20] sm:$0xff]  ;;  %v648_v10 = vld [vmem:[%s2480_s1 + $0x28] sm:$0xff] }
  0x8c   : > { %1790 = vmatprep.subr.bf16.mxu0 %v1988_v22  ;;  %1865 = vmatpush3.bf16.msra.mxu1 %v1997_v38  ;;  %v440_v11 = vld [vmem:[%s2498_s12 + $0x28] sm:$0xff]  ;;  %v439_v13 = vld [vmem:[%s2498_s12 + $0x20] sm:$0xff]  ;;  %v457_v18 = vld [vmem:[%s2473_s20 + $0x30] sm:$0xff]  ;;  %v664_v19 = vpack.c.bf16 %v648_v10, %v647_v9 }
  0x8d   : > { %530 = vperm.xlu1 %1979, %v476_v16   ;;  %525 = vperm.xlu0 %1978, %v475_v17   ;;  %v458_v16 = vld [vmem:[%s2473_s20 + $0x38] sm:$0xff]  ;;  %v441_v29 = vld [vmem:[%s2498_s12 + $0x30] sm:$0xff] }
  0x8e   : > { %1866 = vmatprep.subr.bf16.mxu1 %v1998_v39 }
  0x8f   : > { %1791 = vmatpush3.bf16.msra.mxu0 %v1989_v23 }
  0x90   : > { %1792 = vmatprep.subr.bf16.mxu0 %v1990_v26  ;;  %1867 = vmatpush3.bf16.msra.mxu1 %v1998_v39  ;;  %v650_v26 = vld [vmem:[%s2480_s1 + $0x38] sm:$0xff] }
  0x91   : > { %540 = vperm.xlu1 %1979, %v478_v20   ;;  %535 = vperm.xlu0 %1978, %v477_v21  }
  0x93   : > { %1793 = vmatpush3.bf16.msra.mxu0 %v1991_v27  ;;  %v442_v27 = vld [vmem:[%s2498_s12 + $0x38] sm:$0xff] }
  0x94   : > { %1794 = vmatprep.subr.bf16.mxu0 %v1992_v33 }
  0x95   : > { %550 = vperm.xlu1 %1979, %v480_v24   ;;  %545 = vperm.xlu0 %1978, %v479_v25   ;;  %v649_v25 = vld [vmem:[%s2480_s1 + $0x30] sm:$0xff] }
  0x97   : > { %1795 = vmatpush3.bf16.msra.mxu0 %v1993_v34  ;;  %v459_v34 = vld [vmem:[%s2473_s20 + $0x40] sm:$0xff] }
  0x98   : > { %1796 = vmatprep.subr.bf16.mxu0 %v1994_v35  ;;  %v666_v35 = vpack.c.bf16 %v650_v26, %v649_v25  ;;  %v465_v25 = vld [vmem:[%s2473_s20 + $0x70] sm:$0xff] }
  0x99   : > { %560 = vperm.xlu1 %1979, %v482_v31   ;;  %555 = vperm.xlu0 %1978, %v481_v32   ;;  %v460_v32 = vld [vmem:[%s2473_s20 + $0x48] sm:$0xff] }
  0x9b   : > { %1797 = vmatpush3.bf16.msra.mxu0 %v1995_v36 }
  0xf8   : > { %v496_v41 = vpop.permute.xlu1 %495  ;;  %v486_v42 = vpop.permute.xlu0 %485 }
  0xf9   : > { %vm563_vm1 = vcmp.lt.f32.partialorder %v451_v40, %v486_v42  ;;  %vm565_vm2 = vcmp.lt.f32.partialorder %v453_v43, %v496_v41  ;;  %v651_v41 = vld [vmem:[%s2480_s1 + $0x40] sm:$0xff]  ;;  %v652_v42 = vld [vmem:[%s2480_s1 + $0x48] sm:$0xff] }
  0xfa   : > { %v2529_v46 = vsel %vm563_vm1, 1.0, %v2263_v45  ;;  %v2543_v58 = vsel %vm565_vm2, 1.0, %v2263_v45  ;;  %v444_v43 = vld [vmem:[%s2498_s12 + $0x48] sm:$0xff] }
  0xfb   : > { %v611_v52 = vsub.f32 %v435_v44, %v2529_v46  ;;  %v613_v4 = vsub.f32 %v437_v57, %v2543_v58 }
  0xfc   : > { %v501_v49 = vpop.permute.xlu1 %500  ;;  %v491_v50 = vpop.permute.xlu0 %490 }
  0xfd   : > { %vm566_vm3 = vcmp.lt.f32.partialorder %v454_v47, %v501_v49  ;;  %vm564_vm4 = vcmp.lt.f32.partialorder %v452_v48, %v491_v50  ;;  %v627_v61 = vand.u32 2147483647, %v611_v52  ;;  %v629_v7 = vand.u32 2147483647, %v613_v4  ;;  %v443_v47 = vld [vmem:[%s2498_s12 + $0x40] sm:$0xff]  ;;  %v461_v52 = vld [vmem:[%s2473_s20 + $0x50] sm:$0xff] }
  0xfe   : > { %v2536_v53 = vsel %vm564_vm4, 1.0, %v2263_v45  ;;  %v2547_v60 = vsel %vm566_vm3, 1.0, %v2263_v45  ;;  %v462_v50 = vld [vmem:[%s2473_s20 + $0x58] sm:$0xff] }
  0xff   : > { %v612_v54 = vsub.f32 %v436_v51, %v2536_v53  ;;  %v614_v5 = vsub.f32 %v438_v59, %v2547_v60 }
 0x100   : > { %v511_v63 = vpop.permute.xlu1 %510  ;;  %v506_v1 = vpop.permute.xlu0 %505 }
 0x101   : > { %v628_v62 = vand.u32 2147483647, %v612_v54  ;;  %vm568_vm5 = vcmp.lt.f32.partialorder %v456_v0, %v511_v63  ;;  %vm567_vm6 = vcmp.lt.f32.partialorder %v455_v2, %v506_v1  ;;  %v630_v8 = vand.u32 2147483647, %v614_v5  ;;  %v654_v63 = vld [vmem:[%s2480_s1 + $0x58] sm:$0xff]  ;;  %v445_v2 = vld [vmem:[%s2498_s12 + $0x50] sm:$0xff] }
 0x102   : > { %v2557_v12 = vsel %vm568_vm5, 1.0, %v2263_v45  ;;  %v2561_v14 = vsel %vm567_vm6, 1.0, %v2263_v45  ;;  %v668_v54 = vpack.c.bf16 %v652_v42, %v651_v41  ;;  %v446_v0 = vld [vmem:[%s2498_s12 + $0x58] sm:$0xff]  ;;  %v464_v5 = vld [vmem:[%s2473_s20 + $0x68] sm:$0xff] }
 0x103   : > { %v659_v6 = vpack.c.bf16 %v628_v62, %v627_v61  ;;  %v616_v20 = vsub.f32 %v440_v11, %v2557_v12  ;;  %v615_v21 = vsub.f32 %v439_v13, %v2561_v14  ;;  %v661_v22 = vpack.c.bf16 %v630_v8, %v629_v7  ;;  %v653_v62 = vld [vmem:[%s2480_s1 + $0x50] sm:$0xff]  ;;  %v463_v7 = vld [vmem:[%s2473_s20 + $0x60] sm:$0xff] }
 0x104   : > { %v521_v15 = vpop.permute.xlu1 %520  ;;  %v516_v17 = vpop.permute.xlu0 %515  ;;  %v670_v8 = vpack.c.bf16 %v654_v63, %v653_v62  ;;  %v2638_v63 = vld [vmem:[%s3094_s5] ss:$0 sm:$0xff] }
 0x105   : > { %843 = vmatmul.mubr.bf16.vlgmr.msra.gmra.mxu0 %v659_v6  ;;  %vm570_vm7 = vcmp.lt.f32.partialorder %v458_v16, %v521_v15  ;;  %vm569_vm8 = vcmp.lt.f32.partialorder %v457_v18, %v516_v17  ;;  %v632_v23 = vand.u32 2147483647, %v616_v20  ;;  %v631_v24 = vand.u32 2147483647, %v615_v21  ;;  %v655_v16 = vld [vmem:[%s2480_s1 + $0x60] sm:$0xff]  ;;  %v656_v17 = vld [vmem:[%s2480_s1 + $0x68] sm:$0xff] }
 0x106   : > { %850 = vmatprep.mubr.bf16.mxu0 %v662_v3  ;;  %v2571_v28 = vsel %vm570_vm7, 1.0, %v2263_v45  ;;  %v2575_v30 = vsel %vm569_vm8, 1.0, %v2263_v45  ;;  %v448_v18 = vld [vmem:[%s2498_s12 + $0x68] sm:$0xff]  ;;  %v447_v20 = vld [vmem:[%s2498_s12 + $0x60] sm:$0xff]  ;;  %v672_v26 = vpack.c.bf16 %v656_v17, %v655_v16 }
 0x107   : > { %v618_v36 = vsub.f32 %v442_v27, %v2571_v28  ;;  %v617_v37 = vsub.f32 %v441_v29, %v2575_v30  ;;  %v663_v38 = vpack.c.bf16 %v632_v23, %v631_v24  ;;  %v466_v23 = vld [vmem:[%s2473_s20 + $0x78] sm:$0xff] }
 0x108   : > { %v531_v31 = vpop.permute.xlu1 %530  ;;  %v526_v33 = vpop.permute.xlu0 %525 }
 0x109   : > { %vm572_vm9 = vcmp.lt.f32.partialorder %v460_v32, %v531_v31  ;;  %vm571_vm10 = vcmp.lt.f32.partialorder %v459_v34, %v526_v33  ;;  %v634_v39 = vand.u32 2147483647, %v618_v36  ;;  %v633_v40 = vand.u32 2147483647, %v617_v37  ;;  %v657_v34 = vld [vmem:[%s2480_s1 + $0x70] sm:$0xff] }
 0x10a   : > { %v2585_v44 = vsel %vm572_vm9, 1.0, %v2263_v45  ;;  %v2589_v48 = vsel %vm571_vm10, 1.0, %v2263_v45  ;;  %v450_v36 = vld [vmem:[%s2498_s12 + $0x78] sm:$0xff] }
 0x10b   : > { %v620_v55 = vsub.f32 %v444_v43, %v2585_v44  ;;  %v619_v56 = vsub.f32 %v443_v47, %v2589_v48  ;;  %v665_v57 = vpack.c.bf16 %v634_v39, %v633_v40 }
 0x10c   : > { %v541_v49 = vpop.permute.xlu1 %540  ;;  %v536_v51 = vpop.permute.xlu0 %535 }
 0x10d   : > { %851 = vmatmul.mubr.bf16.gmra.mxu0 %v661_v22  ;;  %vm574_vm11 = vcmp.lt.f32.partialorder %v462_v50, %v541_v49  ;;  %vm573_vm12 = vcmp.lt.f32.partialorder %v461_v52, %v536_v51  ;;  %v636_v59 = vand.u32 2147483647, %v620_v55  ;;  %v635_v61 = vand.u32 2147483647, %v619_v56  ;;  %v1999_v51 = vld [vmem:[#allocation10 + $0x20] sm:$0xff]   ;;  %v2000_v52 = vld [vmem:[#allocation10 + $0x18] sm:$0xff]  }
 0x10e   : > { %858 = vmatprep.mubr.bf16.mxu0 %v664_v19  ;;  %v2599_v1 = vsel %vm574_vm11, 1.0, %v2263_v45  ;;  %v2603_v3 = vsel %vm573_vm12, 1.0, %v2263_v45  ;;  %1868 = vmatprep.subr.bf16.mxu1 %v1999_v51  ;;  %v2002_v55 = vld [vmem:[#allocation10 + $0x8] sm:$0xff]   ;;  %v2003_v56 = vld [vmem:[#allocation10] sm:$0xff]  }
 0x10f   : > { %v622_v9 = vsub.f32 %v446_v0, %v2599_v1  ;;  %v621_v10 = vsub.f32 %v445_v2, %v2603_v3  ;;  %v667_v11 = vpack.c.bf16 %v636_v59, %v635_v61  ;;  %1869 = vmatpush3.bf16.msra.mxu1 %v1999_v51 }
 0x110   : > { %v551_v4 = vpop.permute.xlu1 %550  ;;  %v546_v6 = vpop.permute.xlu0 %545  ;;  %1870 = vmatprep.subr.bf16.mxu1 %v2000_v52 }
 0x111   : > { %vm576_vm13 = vcmp.lt.f32.partialorder %v464_v5, %v551_v4  ;;  %vm575_vm14 = vcmp.lt.f32.partialorder %v463_v7, %v546_v6  ;;  %v638_v13 = vand.u32 2147483647, %v622_v9  ;;  %v637_v15 = vand.u32 2147483647, %v621_v10 }
 0x112   : > { %v2613_v19 = vsel %vm576_vm13, 1.0, %v2263_v45  ;;  %v2617_v21 = vsel %vm575_vm14, 1.0, %v2263_v45 }
 0x113   : > { %v624_v27 = vsub.f32 %v448_v18, %v2613_v19  ;;  %v623_v29 = vsub.f32 %v447_v20, %v2617_v21  ;;  %v669_v31 = vpack.c.bf16 %v638_v13, %v637_v15  ;;  %1871 = vmatpush3.bf16.msra.mxu1 %v2000_v52 }
 0x114   : > { %v561_v22 = vpop.permute.xlu1 %560  ;;  %v556_v24 = vpop.permute.xlu0 %555 }
 0x115   : > { %859 = vmatmul.mubr.bf16.gmra.mxu0 %v663_v38  ;;  %vm578_vm15 = vcmp.lt.f32.partialorder %v466_v23, %v561_v22  ;;  %vm577_vm0 = vcmp.lt.f32.partialorder %v465_v25, %v556_v24  ;;  %v640_v32 = vand.u32 2147483647, %v624_v27  ;;  %v639_v33 = vand.u32 2147483647, %v623_v29  ;;  %v449_v38 = vld [vmem:[%s2498_s12 + $0x70] sm:$0xff] }
 0x116   : > { %866 = vmatprep.mubr.bf16.mxu0 %v666_v35  ;;  %v658_v35 = vld [vmem:[%s2480_s1 + $0x78] sm:$0xff]  ;;  %v2627_v37 = vsel %vm578_vm15, 1.0, %v2263_v45  ;;  %v2631_v39 = vsel %vm577_vm0, 1.0, %v2263_v45 }
 0x117   : > { %v674_v40 = vpack.c.bf16 %v658_v35, %v657_v34  ;;  %v626_v41 = vsub.f32 %v450_v36, %v2627_v37  ;;  %v625_v42 = vsub.f32 %v449_v38, %v2631_v39  ;;  %v671_v43 = vpack.c.bf16 %v640_v32, %v639_v33 }
 0x119   : > { %v642_v47 = vand.u32 2147483647, %v626_v41  ;;  %v641_v49 = vand.u32 2147483647, %v625_v42 }
 0x11b   : > { %v673_v50 = vpack.c.bf16 %v642_v47, %v641_v49 }
 0x11d   : > { %867 = vmatmul.mubr.bf16.gmra.mxu0 %v665_v57 }
 0x11e   : > { %874 = vmatprep.mubr.bf16.mxu0 %v668_v54  ;;  %v2001_v54 = vld [vmem:[#allocation10 + $0x10] sm:$0xff]  }
 0x11f   : > { %1872 = vmatprep.subr.bf16.mxu1 %v2001_v54 }
 0x120   : > { %1873 = vmatpush3.bf16.msra.mxu1 %v2001_v54 }
 0x121   : > { %1874 = vmatprep.subr.bf16.mxu1 %v2002_v55 }
 0x124   : > { %1875 = vmatpush3.bf16.msra.mxu1 %v2002_v55 }
 0x125   : > { %875 = vmatmul.mubr.bf16.gmra.mxu0 %v667_v11  ;;  %1876 = vmatprep.subr.bf16.mxu1 %v2003_v56 }
 0x126   : > { %882 = vmatprep.mubr.bf16.mxu0 %v670_v8 }
 0x128   : > { %1877 = vmatpush3.bf16.msra.mxu1 %v2003_v56 }
 0x12d   : > { %883 = vmatmul.mubr.bf16.gmra.mxu0 %v669_v31 }
 0x12e   : > { %890 = vmatprep.mubr.bf16.mxu0 %v672_v26 }
 0x135   : > { %891 = vmatmul.mubr.bf16.gmra.mxu0 %v671_v43 }
 0x136   : > { %898 = vmatprep.mubr.bf16.mxu0 %v674_v40 }
 0x13d   : > { %899 = vmatmul.mubr.bf16.gmra.mxu0 %v673_v50 }
 0x1c5   : > { %v1798_v57 = vpop.f32.mrf.mxu0 }
 0x1c7   : > { %v1799_v59 = vpop.f32.mrf.mxu0 }
 0x1c8   : > { %v1800_v61 = vadd.f32 %v1799_v59, %v1798_v57 }
 0x1c9   : > { %v1801_v62 = vpop.f32.mrf.mxu0 }
 0x1ca   : > { %v845_v4 = vadd.f32 %v1800_v61, %v2638_v63 }
 0x1cb   : > { %v1802_v0 = vpop.f32.mrf.mxu0 }
 0x1cc   : > { %v1803_v2 = vadd.f32 %v1802_v0, %v1801_v62  ;;  %v907_v9 = vmax.f32 %v845_v4, 0.0 }
 0x1cd   : > { %v1804_v5 = vpop.f32.mrf.mxu0 }
 0x1ce   : > { %v848_v6 = vadd.f32 %v1803_v2, %v2638_v63 }
 0x1cf   : > { %v1805_v7 = vpop.f32.mrf.mxu0 }
 0x1d0   : > { %v1806_v8 = vadd.f32 %v1805_v7, %v1804_v5  ;;  %v908_v10 = vmax.f32 %v848_v6, 0.0 }
 0x1d1   : > { %v1807_v11 = vpop.f32.mrf.mxu0 }
 0x1d2   : > { %v923_v13 = vpack.c.bf16 %v908_v10, %v907_v9  ;;  %v853_v16 = vadd.f32 %v1806_v8, %v2638_v63 }
 0x1d3   : > { %v1808_v15 = vpop.f32.mrf.mxu0 }
 0x1d4   : > { %v1809_v17 = vadd.f32 %v1808_v15, %v1807_v11  ;;  %1878 = vmatprep.mubr.bf16.mxu1 %v923_v13  ;;  %v909_v23 = vmax.f32 %v853_v16, 0.0 }
 0x1d5   : > { %v1810_v18 = vpop.f32.mrf.mxu0 }
 0x1d6   : > { %v856_v20 = vadd.f32 %v1809_v17, %v2638_v63 }
 0x1d7   : > { %v1811_v22 = vpop.f32.mrf.mxu0 }
 0x1d8   : > { %v910_v24 = vmax.f32 %v856_v20, 0.0  ;;  %v1812_v25 = vadd.f32 %v1811_v22, %v1810_v18 }
 0x1d9   : > { %v1813_v26 = vpop.f32.mrf.mxu0 }
 0x1da   : > { %v924_v27 = vpack.c.bf16 %v910_v24, %v909_v23  ;;  %v861_v31 = vadd.f32 %v1812_v25, %v2638_v63 }
 0x1db   : > { %v1814_v29 = vpop.f32.mrf.mxu0 }
 0x1dc   : > { %v1815_v32 = vadd.f32 %v1814_v29, %v1813_v26  ;;  %1879 = vmatmul.mubr.bf16.vlgmr.msra.gmra.mxu1 %v924_v27  ;;  %v911_v36 = vmax.f32 %v861_v31, 0.0 }
 0x1dd   : > { %v1816_v33 = vpop.f32.mrf.mxu0 }
 0x1de   : > { %v864_v34 = vadd.f32 %v1815_v32, %v2638_v63 }
 0x1df   : > { %v1817_v35 = vpop.f32.mrf.mxu0 }
 0x1e0   : > { %v912_v38 = vmax.f32 %v864_v34, 0.0  ;;  %v1818_v40 = vadd.f32 %v1817_v35, %v1816_v33 }
 0x1e1   : > { %v1819_v41 = vpop.f32.mrf.mxu0 }
 0x1e2   : > { %v925_v42 = vpack.c.bf16 %v912_v38, %v911_v36  ;;  %v869_v47 = vadd.f32 %v1818_v40, %v2638_v63 }
 0x1e3   : > { %v1820_v43 = vpop.f32.mrf.mxu0 }
 0x1e4   : > { %v1821_v49 = vadd.f32 %v1820_v43, %v1819_v41  ;;  %1882 = vmatprep.mubr.bf16.mxu1 %v925_v42  ;;  %v913_v54 = vmax.f32 %v869_v47, 0.0 }
 0x1e5   : > { %v1822_v50 = vpop.f32.mrf.mxu0 }
 0x1e6   : > { %v872_v51 = vadd.f32 %v1821_v49, %v2638_v63 }
 0x1e7   : > { %v1823_v52 = vpop.f32.mrf.mxu0 }
 0x1e8   : > { %v914_v55 = vmax.f32 %v872_v51, 0.0  ;;  %v1824_v56 = vadd.f32 %v1823_v52, %v1822_v50  ;;  %v2659_v52 = vld [vmem:[%s3096_s7] ss:$0 sm:$0xff] }
 0x1e9   : > { %v1825_v57 = vpop.f32.mrf.mxu0 }
 0x1ea   : > { %v926_v59 = vpack.c.bf16 %v914_v55, %v913_v54  ;;  %v877_v62 = vadd.f32 %v1824_v56, %v2638_v63 }
 0x1eb   : > { %v1826_v61 = vpop.f32.mrf.mxu0 }
 0x1ec   : > { %v1827_v0 = vadd.f32 %v1826_v61, %v1825_v57  ;;  %1883 = vmatmul.mubr.bf16.gmra.mxu1 %v926_v59  ;;  %v915_v6 = vmax.f32 %v877_v62, 0.0 }
 0x1ed   : > { %v1828_v2 = vpop.f32.mrf.mxu0 }
 0x1ee   : > { %v880_v4 = vadd.f32 %v1827_v0, %v2638_v63 }
 0x1ef   : > { %v1829_v5 = vpop.f32.mrf.mxu0 }
 0x1f0   : > { %v916_v7 = vmax.f32 %v880_v4, 0.0  ;;  %v1830_v8 = vadd.f32 %v1829_v5, %v1828_v2 }
 0x1f1   : > { %v1831_v9 = vpop.f32.mrf.mxu0 }
 0x1f2   : > { %v927_v10 = vpack.c.bf16 %v916_v7, %v915_v6  ;;  %v885_v13 = vadd.f32 %v1830_v8, %v2638_v63 }
 0x1f3   : > { %v1832_v11 = vpop.f32.mrf.mxu0 }
 0x1f4   : > { %v1833_v15 = vadd.f32 %v1832_v11, %v1831_v9  ;;  %1886 = vmatprep.mubr.bf16.mxu1 %v927_v10  ;;  %v917_v20 = vmax.f32 %v885_v13, 0.0 }
 0x1f5   : > { %v1834_v16 = vpop.f32.mrf.mxu0 }
 0x1f6   : > { %v888_v17 = vadd.f32 %v1833_v15, %v2638_v63 }
 0x1f7   : > { %v1835_v18 = vpop.f32.mrf.mxu0 }
 0x1f8   : > { %v918_v22 = vmax.f32 %v888_v17, 0.0  ;;  %v1836_v23 = vadd.f32 %v1835_v18, %v1834_v16 }
 0x1f9   : > { %v1837_v24 = vpop.f32.mrf.mxu0 }
 0x1fa   : > { %v928_v25 = vpack.c.bf16 %v918_v22, %v917_v20  ;;  %v893_v27 = vadd.f32 %v1836_v23, %v2638_v63 }
 0x1fb   : > { %v1838_v26 = vpop.f32.mrf.mxu0 }
 0x1fc   : > { %v1839_v29 = vadd.f32 %v1838_v26, %v1837_v24  ;;  %1887 = vmatmul.mubr.bf16.gmra.mxu1 %v928_v25  ;;  %v919_v34 = vmax.f32 %v893_v27, 0.0 }
 0x1fd   : > { %v1840_v31 = vpop.f32.mrf.mxu0 }
 0x1fe   : > { %v896_v32 = vadd.f32 %v1839_v29, %v2638_v63 }
 0x1ff   : > { %v1841_v33 = vpop.f32.mrf.mxu0 }
 0x200   : > { %v920_v35 = vmax.f32 %v896_v32, 0.0  ;;  %v1842_v36 = vadd.f32 %v1841_v33, %v1840_v31 }
 0x201   : > { %v1843_v38 = vpop.f32.mrf.mxu0 }
 0x202   : > { %v929_v40 = vpack.c.bf16 %v920_v35, %v919_v34  ;;  %v901_v42 = vadd.f32 %v1842_v36, %v2638_v63 }
 0x203   : > { %v1844_v41 = vpop.f32.mrf.mxu0 }
 0x204   : > { %v1845_v43 = vadd.f32 %v1844_v41, %v1843_v38  ;;  %1890 = vmatprep.mubr.bf16.mxu1 %v929_v40  ;;  %v921_v49 = vmax.f32 %v901_v42, 0.0 }
 0x206   : > { %v904_v47 = vadd.f32 %v1845_v43, %v2638_v63 }
 0x208   : > { %v922_v50 = vmax.f32 %v904_v47, 0.0 }
 0x20a   : > { %v930_v51 = vpack.c.bf16 %v922_v50, %v921_v49 }
 0x20c   : > { %1891 = vmatmul.mubr.bf16.gmra.mxu1 %v930_v51 }
 0x29c   : > { %v1880_v54 = vpop.f32.mrf.mxu1 }
 0x29d   : > { %v1045_v55 = vadd.f32 %v1880_v54, %v2659_v52 }
 0x29e   : > { %v1036_v56 = vpop.f32.mrf.mxu1 }
 0x29f   : > { %v1149_v57 = vand.u32 2147483647, %v1045_v55  ;;  %v1037_v59 = vadd.f32 %v2659_v52, %v1036_v56  ;;  %vm1402_vm1 = vcmp.gt.f32.partialorder %v1045_v55, 0.0  ;;  %v1101_v29 = vmax.f32 %v1045_v55, 0.0 }
 0x2a0   : > { %v1881_v61 = vpop.f32.mrf.mxu1  ;;  %v1745_v24 = vsel %vm1402_vm1, 1.0, %v2263_v45  ;;  %v1117_v33 = vmul.f32 %v2543_v58, %v1045_v55 }
 0x2a1   : > { %v1147_v62 = vand.u32 2147483647, %v1037_v59  ;;  %v1048_v63 = vadd.f32 %v1881_v61, %v2659_v52  ;;  %v1165_v0 = vsub.f32 0.0, %v1149_v57  ;;  %vm1400_vm3 = vcmp.gt.f32.partialorder %v1037_v59, 0.0 }
 0x2a2   : > { %v1039_v2 = vpop.f32.mrf.mxu1  ;;  %v1743_v31 = vsel %vm1400_vm3, 1.0, %v2263_v45  ;;  %vm1451_vm4 = vcmp.eq.f32.partialorder %v1745_v24, %v2543_v58  ;;  %v1099_v34 = vmax.f32 %v1037_v59, 0.0  ;;  %v1115_v36 = vmul.f32 %v2529_v46, %v1037_v59 }
 0x2a3   : > { %v1163_v4 = vsub.f32 0.0, %v1147_v62  ;;  %v1150_v5 = vand.u32 2147483647, %v1048_v63  ;;  %v1183_v6 = vmul.f32 1.442695, %v1165_v0  ;;  %v2665_v7 = vadd.f32 %v2659_v52, %v1039_v2 }
 0x2a4   : > { %vm1403_vm5 = vcmp.gt.f32.partialorder %v1048_v63, 0.0  ;;  %v1102_v38 = vmax.f32 %v1048_v63, 0.0  ;;  %v1118_v40 = vmul.f32 %v2547_v60, %v1048_v63  ;;  %vm1449_vm7 = vcmp.eq.f32.partialorder %v1743_v31, %v2529_v46 }
 0x2a5   : > { %v1148_v8 = vand.u32 2147483647, %v2665_v7  ;;  %v1179_v9 = vmul.f32 1.442695, %v1163_v4  ;;  %v1166_v10 = vsub.f32 0.0, %v1150_v5  ;;  %2004 = vpow2.f32 %v1183_v6 }
 0x2a6   : > { %vm1401_vm2 = vcmp.gt.f32.partialorder %v2665_v7, 0.0  ;;  %v1746_v47 = vsel %vm1403_vm5, 1.0, %v2263_v45  ;;  %v2695_v51 = vsub.f32 %v1101_v29, %v1117_v33  ;;  %v1761_v54 = vsel %vm1451_vm4, 1.0, %v2263_v45 }
 0x2a7   : > { %v1164_v13 = vsub.f32 0.0, %v1148_v8  ;;  %2006 = vpow2.f32 %v1179_v9  ;;  %v1185_v15 = vmul.f32 1.442695, %v1166_v10  ;;  %v1744_v25 = vsel %vm1401_vm2, 1.0, %v2263_v45 }
 0x2a8   : > { %vm1450_vm6 = vcmp.eq.f32.partialorder %v1744_v25, %v2536_v53  ;;  %v2701_v56 = vsub.f32 %v1099_v34, %v1115_v36  ;;  %v1759_v46 = vsel %vm1449_vm7, 1.0, %v2263_v45  ;;  %v2705_v59 = vsub.f32 %v1102_v38, %v1118_v40 }
 0x2a9   : > { %v1181_v18 = vmul.f32 1.442695, %v1164_v13  ;;  %2008 = vpow2.f32 %v1185_v15  ;;  %v1760_v55 = vsel %vm1450_vm6, 1.0, %v2263_v45  ;;  %vm1452_vm8 = vcmp.eq.f32.partialorder %v1746_v47, %v2547_v60 }
 0x2aa   : > { %v1497_v58 = vadd.f32 %v1760_v55, %v1759_v46  ;;  %v1100_v2 = vmax.f32 %v2665_v7, 0.0  ;;  %v1116_v4 = vmul.f32 %v2536_v53, %v2665_v7 }
 0x2ab   : > { %2010 = vpow2.f32 %v1181_v18 }
 0x2ac   : > { %v1884_v11 = vpop.f32.mrf.mxu1 }
 0x2ad   : > { %v2669_v16 = vadd.f32 %v1884_v11, %v2659_v52 }
 0x2ae   : > { %v1052_v17 = vpop.f32.mrf.mxu1 }
 0x2af   : > { %v2672_v20 = vadd.f32 %v2659_v52, %v1052_v17  ;;  %v1153_v22 = vand.u32 2147483647, %v2669_v16  ;;  %vm1406_vm9 = vcmp.gt.f32.partialorder %v2669_v16, 0.0  ;;  %v1105_v5 = vmax.f32 %v2669_v16, 0.0 }
 0x2b0   : > { %v1885_v23 = vpop.f32.mrf.mxu1  ;;  %v1121_v6 = vmul.f32 %v2575_v30, %v2669_v16  ;;  %v1749_v15 = vsel %vm1406_vm9, 1.0, %v2263_v45  ;;  %v1762_v16 = vsel %vm1452_vm8, 1.0, %v2263_v45  ;;  %v1498_v17 = vadd.f32 %v1761_v54, %v1497_v58 }
 0x2b1   : > { %v1151_v26 = vand.u32 2147483647, %v2672_v20  ;;  %v1169_v32 = vsub.f32 0.0, %v1153_v22  ;;  %v2711_v63 = vadd.f32 %v1885_v23, %v2659_v52  ;;  %vm1404_vm10 = vcmp.gt.f32.partialorder %v2672_v20, 0.0 }
 0x2b2   : > { %v2679_v27 = vpop.eup %2004  ;;  %v1055_v35 = vpop.f32.mrf.mxu1  ;;  %v2732_v22 = vsub.f32 %v1100_v2, %v1116_v4  ;;  %v2735_v24 = vsub.f32 %v1105_v5, %v1121_v6  ;;  %v1747_v25 = vsel %vm1404_vm10, 1.0, %v2263_v45  ;;  %vm1455_vm11 = vcmp.eq.f32.partialorder %v1749_v15, %v2575_v30 }
 0x2b3   : > { %v1229_v42 = vadd.f32 1.0, %v2679_v27  ;;  %v1167_v43 = vsub.f32 0.0, %v1151_v26  ;;  %v1191_v49 = vmul.f32 1.442695, %v1169_v32  ;;  %v2693_v50 = vadd.f32 %v2659_v52, %v1055_v35 }
 0x2b4   : > { %v2687_v41 = vpop.eup %2006  ;;  %v1232_v13 = vmul.f32 -0.5, %v2679_v27  ;;  %v1154_v53 = vand.u32 2147483647, %v2711_v63  ;;  %v1103_v26 = vmax.f32 %v2672_v20, 0.0  ;;  %v1119_v29 = vmul.f32 %v2561_v14, %v2672_v20 }
 0x2b5   : > { %v1211_v57 = vadd.f32 1.0, %v2687_v41  ;;  %2012 = vlog2.f32 %v1229_v42  ;;  %v1187_v62 = vmul.f32 1.442695, %v1167_v43  ;;  %v1152_v0 = vand.u32 2147483647, %v2693_v50 }
 0x2b6   : > { %v2707_v61 = vpop.eup %2008  ;;  %2014 = vpow2.f32 %v1191_v49  ;;  %v1214_v7 = vmul.f32 -0.5, %v2687_v41  ;;  %v1233_v31 = vadd.f32 1.0, %v1232_v13  ;;  %v1235_v32 = vand.u32 2147483647, %v2679_v27 }
 0x2b7   : > { %2016 = vlog2.f32 %v1211_v57  ;;  %v1238_v9 = vadd.f32 1.0, %v2707_v61  ;;  %v1168_v10 = vsub.f32 0.0, %v1152_v0  ;;  %v1170_v33 = vsub.f32 0.0, %v1154_v53 }
 0x2b8   : > { %v2721_v8 = vpop.eup %2010  ;;  %2018 = vpow2.f32 %v1187_v62  ;;  %v1215_v34 = vadd.f32 1.0, %v1214_v7  ;;  %v1241_v35 = vmul.f32 -0.5, %v2707_v61  ;;  %vm1453_vm12 = vcmp.eq.f32.partialorder %v1747_v25, %v2561_v14 }
 0x2b9   : > { %v1189_v18 = vmul.f32 1.442695, %v1168_v10  ;;  %v1220_v23 = vadd.f32 1.0, %v2721_v8  ;;  %2020 = vlog2.f32 %v1238_v9  ;;  %v1499_v36 = vadd.f32 %v1762_v16, %v1498_v17 }
 0x2ba   : > { %vm1407_vm13 = vcmp.gt.f32.partialorder %v2711_v63, 0.0  ;;  %v1217_v40 = vand.u32 2147483647, %v2687_v41  ;;  %v1223_v42 = vmul.f32 -0.5, %v2721_v8  ;;  %v2757_v43 = vsel %vm1455_vm11, 1.0, %v2263_v45 }
 0x2bb   : > { %2022 = vpow2.f32 %v1189_v18  ;;  %v2759_v14 = vsub.f32 %v1103_v26, %v1119_v29  ;;  %v2762_v47 = vmul.f32 %v2679_v27, %v1233_v31  ;;  %vm2764_vm14 = vcmp.lt.f32.partialorder %v1235_v32, 0.0004427343 }
 0x2bc   : > { %v1888_v11 = vpop.f32.mrf.mxu1  ;;  %2024 = vlog2.f32 %v1220_v23  ;;  %v1763_v54 = vsel %vm1453_vm12, 1.0, %v2263_v45  ;;  %v1106_v55 = vmax.f32 %v2711_v63, 0.0  ;;  %v1193_v57 = vmul.f32 1.442695, %v1170_v33 }
 0x2bd   : > { %v2747_v38 = vadd.f32 %v1888_v11, %v2659_v52  ;;  %v1244_v62 = vand.u32 2147483647, %v2707_v61  ;;  %v1122_v30 = vmul.f32 %v2571_v28, %v2711_v63  ;;  %v1750_v58 = vsel %vm1407_vm13, 1.0, %v2263_v45 }
 0x2be   : > { %v1068_v60 = vpop.f32.mrf.mxu1  ;;  %vm1405_vm15 = vcmp.gt.f32.partialorder %v2693_v50, 0.0  ;;  %v2778_v0 = vmul.f32 %v2687_v41, %v1215_v34  ;;  %v1242_v2 = vadd.f32 1.0, %v1241_v35  ;;  %vm2782_vm0 = vcmp.lt.f32.partialorder %v1217_v40, 0.0004427343 }
 0x2bf   : > { %v2750_v20 = vadd.f32 %v2659_v52, %v1068_v60  ;;  %v1157_v4 = vand.u32 2147483647, %v2747_v38  ;;  %v1224_v63 = vadd.f32 1.0, %v1223_v42  ;;  %v1500_v10 = vadd.f32 %v1763_v54, %v1499_v36 }
 0x2c0   : > { %v1889_v6 = vpop.f32.mrf.mxu1  ;;  %v1104_v11 = vmax.f32 %v2693_v50, 0.0  ;;  %v1120_v13 = vmul.f32 %v2557_v12, %v2693_v50  ;;  %2026 = vpow2.f32 %v1193_v57  ;;  %vm1456_vm1 = vcmp.eq.f32.partialorder %v1750_v58, %v2571_v28 }
 0x2c1   : > { %v1155_v5 = vand.u32 2147483647, %v2750_v20  ;;  %v1748_v41 = vsel %vm1405_vm15, 1.0, %v2263_v45  ;;  %v1226_v17 = vand.u32 2147483647, %v2721_v8  ;;  %v2795_v23 = vsub.f32 %v1106_v55, %v1122_v30 }
 0x2c2   : > { %v2013_v46 = vpop.eup %2012  ;;  %v1243_v25 = vmul.f32 %v2707_v61, %v1242_v2  ;;  %vm2798_vm2 = vcmp.lt.f32.partialorder %v1244_v62, 0.0004427343  ;;  %v1173_v26 = vsub.f32 0.0, %v1157_v4  ;;  %v2803_v29 = vadd.f32 %v1889_v6, %v2659_v52  ;;  %v1071_v60 = vpop.f32.mrf.mxu1 }
 0x2c3   : > { %v2775_v27 = vpop.eup %2014  ;;  %v1171_v53 = vsub.f32 0.0, %v1155_v5  ;;  %v1231_v16 = vmul.f32 0.6931472, %v2013_v46  ;;  %v2806_v31 = vmul.f32 %v2721_v8, %v1224_v63  ;;  %v2809_v32 = vsel %vm1456_vm1, 1.0, %v2263_v45 }
 0x2c4   : > { %v2017_v15 = vpop.eup %2016  ;;  %v1268_v18 = vmul.f32 -0.5, %v2775_v27  ;;  %v2811_v33 = vsub.f32 %v1104_v11, %v1120_v13  ;;  %vm1454_vm3 = vcmp.eq.f32.partialorder %v1748_v41, %v2557_v12  ;;  %v1109_v36 = vmax.f32 %v2747_v38, 0.0 }
 0x2c5   : > { %v2791_v7 = vpop.eup %2018  ;;  %v1195_v28 = vmul.f32 1.442695, %v1171_v53  ;;  %v1213_v34 = vmul.f32 0.6931472, %v2017_v15  ;;  %v1237_v8 = vsel %vm2764_vm14, %v2762_v47, %v1231_v16  ;;  %vm2821_vm4 = vcmp.lt.f32.partialorder %v1226_v17, 0.0004427343 }
 0x2c6   : > { %v2021_v61 = vpop.eup %2020  ;;  %v1247_v35 = vadd.f32 1.0, %v2791_v7  ;;  %v1265_v12 = vadd.f32 1.0, %v2775_v27  ;;  %v1269_v55 = vadd.f32 1.0, %v1268_v18  ;;  %v2828_v57 = vmul.f32 %v2603_v3, %v2747_v38 }
 0x2c7   : > { %2028 = vpow2.f32 %v1195_v28  ;;  %v1764_v46 = vsel %vm1454_vm3, 1.0, %v2263_v45  ;;  %v1199_v62 = vmul.f32 1.442695, %v1173_v26  ;;  %vm1410_vm5 = vcmp.gt.f32.partialorder %v2747_v38, 0.0 }
 0x2c8   : > { %v2816_v42 = vpop.eup %2022  ;;  %v1158_v30 = vand.u32 2147483647, %v2803_v29  ;;  %v1240_v47 = vmul.f32 0.6931472, %v2021_v61  ;;  %v1250_v58 = vmul.f32 -0.5, %v2791_v7  ;;  %v2836_v4 = vadd.f32 %v2659_v52, %v1071_v60 }
 0x2c9   : > { %v2025_v49 = vpop.eup %2024  ;;  %v1256_v2 = vadd.f32 1.0, %v2816_v42  ;;  %v2839_v5 = vadd.f32 %v1237_v8, %v2695_v51  ;;  %v1219_v6 = vsel %vm2782_vm0, %v2778_v0, %v1213_v34  ;;  %v1271_v63 = vand.u32 2147483647, %v2775_v27 }
 0x2ca   : > { %2030 = vlog2.f32 %v1247_v35  ;;  %v2846_v13 = vmul.f32 %v2775_v27, %v1269_v55  ;;  %v1501_v15 = vadd.f32 %v1764_v46, %v1500_v10  ;;  %v1753_v41 = vsel %vm1410_vm5, 1.0, %v2263_v45 }
 0x2cb   : > { %2032 = vlog2.f32 %v1265_v12  ;;  %v1222_v53 = vmul.f32 0.6931472, %v2025_v49  ;;  %v1174_v16 = vsub.f32 0.0, %v1158_v30  ;;  %v1156_v51 = vand.u32 2147483647, %v2836_v4 }
 0x2cc   : > { %v1892_v40 = vpop.f32.mrf.mxu1  ;;  %2034 = vpow2.f32 %v1199_v62  ;;  %v1355_v17 = vadd.f32 %v1219_v6, %v2701_v56  ;;  %v1246_v0 = vsel %vm2798_vm2, %v1243_v25, %v1240_v47  ;;  %v1251_v9 = vadd.f32 1.0, %v1250_v58 }
 0x2cd   : > { %2036 = vlog2.f32 %v1256_v2  ;;  %v1253_v18 = vand.u32 2147483647, %v2791_v7  ;;  %vm1408_vm6 = vcmp.gt.f32.partialorder %v2750_v20, 0.0  ;;  %v1172_v26 = vsub.f32 0.0, %v1156_v51  ;;  %v2858_v60 = vpop.eup %2026 }
 0x2ce   : > { %v1084_v11 = vpop.f32.mrf.mxu1  ;;  %v2856_v10 = vadd.f32 %v1892_v40, %v2659_v52  ;;  %v1502_v61 = vadd.f32 %v2757_v43, %v1501_v15  ;;  %vm1459_vm7 = vcmp.eq.f32.partialorder %v1753_v41, %v2603_v3  ;;  %v1107_v56 = vmax.f32 %v2750_v20, 0.0 }
 0x2cf   : > { %v1123_v25 = vmul.f32 %v2589_v48, %v2750_v20  ;;  %v2866_v50 = vadd.f32 %v1246_v0, %v2705_v59  ;;  %v1228_v34 = vsel %vm2821_vm4, %v2806_v31, %v1222_v53  ;;  %v1201_v35 = vmul.f32 1.442695, %v1174_v16 }
 0x2d0   : > { %v1893_v28 = vpop.f32.mrf.mxu1  ;;  %v1197_v40 = vmul.f32 1.442695, %v1172_v26  ;;  %v2872_v8 = vmul.f32 %v2791_v7, %v1251_v9  ;;  %v1751_v43 = vsel %vm1408_vm6, 1.0, %v2263_v45  ;;  %vm1409_vm8 = vcmp.gt.f32.partialorder %v2836_v4, 0.0 }
 0x2d1   : > { %v1161_v3 = vand.u32 2147483647, %v2856_v10  ;;  %v1274_v20 = vadd.f32 1.0, %v2858_v60  ;;  %v2879_v59 = vsel %vm1459_vm7, 1.0, %v2263_v45  ;;  %v2882_v54 = vadd.f32 %v2659_v52, %v1084_v11 }
 0x2d2   : > { %2038 = vpow2.f32 %v1197_v40  ;;  %v1087_v31 = vpop.f32.mrf.mxu1  ;;  %v1356_v7 = vadd.f32 %v1228_v34, %v2732_v22  ;;  %v1277_v55 = vmul.f32 -0.5, %v2858_v60  ;;  %v2888_v46 = vsub.f32 %v1107_v56, %v1123_v25 }
 0x2d3   : > { %v1177_v62 = vsub.f32 0.0, %v1161_v3  ;;  %vm1457_vm9 = vcmp.eq.f32.partialorder %v1751_v43, %v2589_v48  ;;  %2040 = vpow2.f32 %v1201_v35  ;;  %v1752_v30 = vsel %vm1409_vm8, 1.0, %v2263_v45 }
 0x2d4   : > { %v2884_v12 = vpop.eup %2028  ;;  %v2893_v49 = vadd.f32 %v1893_v28, %v2659_v52  ;;  %vm2895_vm10 = vcmp.lt.f32.partialorder %v1253_v18, 0.0004427343  ;;  %v1159_v2 = vand.u32 2147483647, %v2882_v54  ;;  %v2902_v6 = vadd.f32 %v2659_v52, %v1087_v31 }
 0x2d5   : > { %v1283_v58 = vadd.f32 1.0, %v2884_v12  ;;  %v1207_v22 = vmul.f32 1.442695, %v1177_v62  ;;  %2042 = vlog2.f32 %v1274_v20  ;;  %v1280_v11 = vand.u32 2147483647, %v2858_v60 }
 0x2d6   : > { %v1503_v15 = vadd.f32 %v2809_v32, %v1502_v61  ;;  %v1110_v41 = vmax.f32 %v2803_v29, 0.0  ;;  %v1372_v16 = vadd.f32 %v1356_v7, %v1355_v17  ;;  %v1259_v51 = vmul.f32 -0.5, %v2816_v42 }
 0x2d7   : > { %v2031_v53 = vpop.eup %2030  ;;  %2044 = vpow2.f32 %v1207_v22  ;;  %v1175_v0 = vsub.f32 0.0, %v1159_v2  ;;  %v1278_v18 = vadd.f32 1.0, %v1277_v55  ;;  %v1767_v52 = vsel %vm1457_vm9, 1.0, %v2263_v45 }
 0x2d8   : > { %v2033_v9 = vpop.eup %2032  ;;  %vm1458_vm11 = vcmp.eq.f32.partialorder %v1752_v30, %v2585_v44  ;;  %v1162_v26 = vand.u32 2147483647, %v2893_v49  ;;  %2046 = vlog2.f32 %v1283_v58  ;;  %vm1411_vm12 = vcmp.gt.f32.partialorder %v2803_v29, 0.0 }
 0x2d9   : > { %v2913_v28 = vpop.eup %2034  ;;  %v1203_v32 = vmul.f32 1.442695, %v1175_v0  ;;  %v1160_v17 = vand.u32 2147483647, %v2902_v6  ;;  %v1249_v56 = vmul.f32 0.6931472, %v2031_v53  ;;  %v1504_v3 = vadd.f32 %v1767_v52, %v1503_v15 }
 0x2da   : > { %v2037_v61 = vpop.eup %2036  ;;  %v1262_v25 = vand.u32 2147483647, %v2816_v42  ;;  %vm1412_vm13 = vcmp.gt.f32.partialorder %v2882_v54, 0.0  ;;  %v1178_v48 = vsub.f32 0.0, %v1162_v26  ;;  %vm2921_vm14 = vcmp.lt.f32.partialorder %v1271_v63, 0.0004427343 }
 0x2db   : > { %v1260_v35 = vadd.f32 1.0, %v1259_v51  ;;  %v1768_v40 = vsel %vm1458_vm11, 1.0, %v2263_v45  ;;  %2048 = vpow2.f32 %v1203_v32  ;;  %v1176_v43 = vsub.f32 0.0, %v1160_v17 }
 0x2dc   : > { %v1754_v20 = vsel %vm1411_vm12, 1.0, %v2263_v45  ;;  %v1209_v31 = vmul.f32 1.442695, %v1178_v48  ;;  %vm1413_vm15 = vcmp.gt.f32.partialorder %v2902_v6, 0.0  ;;  %v1258_v7 = vmul.f32 0.6931472, %v2037_v61 }
 0x2dd   : > { %v1301_v55 = vadd.f32 1.0, %v2913_v28  ;;  %v1755_v27 = vsel %vm1412_vm13, 1.0, %v2263_v45  ;;  %v1205_v63 = vmul.f32 1.442695, %v1176_v43  ;;  %v1267_v62 = vmul.f32 0.6931472, %v2033_v9 }
 0x2de   : > { %v1255_v30 = vsel %vm2895_vm10, %v2872_v8, %v1249_v56  ;;  %v1505_v58 = vadd.f32 %v1768_v40, %v1504_v3  ;;  %2050 = vpow2.f32 %v1209_v31  ;;  %v1261_v2 = vmul.f32 %v2816_v42, %v1260_v35 }
 0x2df   : > { %v2933_v22 = vpop.eup %2038  ;;  %vm2936_vm0 = vcmp.lt.f32.partialorder %v1262_v25, 0.0004427343  ;;  %2052 = vpow2.f32 %v1205_v63  ;;  %v1756_v53 = vsel %vm1413_vm15, 1.0, %v2263_v45  ;;  %vm1460_vm1 = vcmp.eq.f32.partialorder %v1754_v20, %v2599_v1 }
 0x2e0   : > { %v1292_v51 = vadd.f32 1.0, %v2933_v22  ;;  %vm1414_vm2 = vcmp.gt.f32.partialorder %v2856_v10, 0.0  ;;  %vm1461_vm3 = vcmp.eq.f32.partialorder %v1755_v27, %v2617_v21  ;;  %v2945_v8 = vpop.eup %2040  ;;  %v1373_v47 = vadd.f32 %v1372_v16, %v2839_v5 }
 0x2e1   : > { %v1359_v42 = vadd.f32 %v1255_v30, %v2759_v14  ;;  %v1264_v0 = vsel %vm2936_vm0, %v1261_v2, %v1258_v7  ;;  %2054 = vlog2.f32 %v1301_v55  ;;  %vm1415_vm4 = vcmp.gt.f32.partialorder %v2893_v49, 0.0 }
 0x2e2   : > { %2056 = vlog2.f32 %v1292_v51  ;;  %vm1462_vm5 = vcmp.eq.f32.partialorder %v1756_v53, %v2613_v19  ;;  %v1506_v9 = vadd.f32 %v2879_v59, %v1505_v58  ;;  %v2043_v52 = vpop.eup %2042  ;;  %v1286_v26 = vmul.f32 -0.5, %v2884_v12 }
 0x2e3   : > { %v1757_v32 = vsel %vm1414_vm2, 1.0, %v2263_v45  ;;  %v1770_v14 = vsel %vm1460_vm1, 1.0, %v2263_v45  ;;  %v1771_v5 = vsel %vm1461_vm3, 1.0, %v2263_v45  ;;  %v1273_v17 = vsel %vm2921_vm14, %v2846_v13, %v1267_v62 }
 0x2e4   : > { %v2960_v16 = vpop.eup %2044  ;;  %v1279_v61 = vmul.f32 %v2858_v60, %v1278_v18  ;;  %vm2968_vm6 = vcmp.lt.f32.partialorder %v1280_v11, 0.0004427343  ;;  %v1507_v56 = vadd.f32 %v1770_v14, %v1506_v9  ;;  %v1310_v25 = vadd.f32 1.0, %v2945_v8 }
 0x2e5   : > { %v1374_v48 = vadd.f32 %v1373_v47, %v2866_v50  ;;  %v1360_v35 = vadd.f32 %v1264_v0, %v2811_v33  ;;  %v1758_v34 = vsel %vm1415_vm4, 1.0, %v2263_v45  ;;  %v1772_v13 = vsel %vm1462_vm5, 1.0, %v2263_v45  ;;  %v2047_v60 = vpop.eup %2046 }
 0x2e6   : > { %vm1463_vm7 = vcmp.eq.f32.partialorder %v1757_v32, %v2631_v39  ;;  %v1508_v11 = vadd.f32 %v1771_v5, %v1507_v56  ;;  %2058 = vlog2.f32 %v1310_v25  ;;  %v1337_v18 = vadd.f32 1.0, %v2960_v16 }
 0x2e7   : > { %v1361_v40 = vadd.f32 %v1273_v17, %v2735_v24  ;;  %v1375_v50 = vadd.f32 %v1374_v48, %v1359_v42  ;;  %v1287_v43 = vadd.f32 1.0, %v1286_v26  ;;  %v1108_v33 = vmax.f32 %v2836_v4, 0.0 }
 0x2e8   : > { %v2985_v3 = vpop.eup %2048  ;;  %v1289_v20 = vand.u32 2147483647, %v2884_v12  ;;  %v1295_v31 = vmul.f32 -0.5, %v2933_v22  ;;  %vm1464_vm8 = vcmp.eq.f32.partialorder %v1758_v34, %v2627_v37  ;;  %v1509_v7 = vadd.f32 %v1772_v13, %v1508_v11 }
 0x2e9   : > { %v1276_v55 = vmul.f32 0.6931472, %v2043_v52  ;;  %v1285_v27 = vmul.f32 0.6931472, %v2047_v60  ;;  %v1773_v63 = vsel %vm1463_vm7, 1.0, %v2263_v45  ;;  %v1319_v62 = vadd.f32 1.0, %v2985_v3 }
 0x2ea   : > { %v1376_v24 = vadd.f32 %v1375_v50, %v1360_v35  ;;  %v1304_v30 = vmul.f32 -0.5, %v2913_v28  ;;  %v1510_v58 = vadd.f32 %v1773_v63, %v1509_v7  ;;  %2060 = vlog2.f32 %v1337_v18 }
 0x2eb   : > { %v2993_v2 = vpop.eup %2050  ;;  %v1288_v15 = vmul.f32 %v2884_v12, %v1287_v43  ;;  %v1124_v53 = vmul.f32 %v2585_v44, %v2836_v4  ;;  %v1774_v51 = vsel %vm1464_vm8, 1.0, %v2263_v45  ;;  %2062 = vlog2.f32 %v1319_v62 }
 0x2ec   : > { %v2999_v47 = vpop.eup %2052  ;;  %vm3001_vm9 = vcmp.lt.f32.partialorder %v1289_v20, 0.0004427343  ;;  %v1296_v0 = vadd.f32 1.0, %v1295_v31  ;;  %v1511_v9 = vadd.f32 %v1774_v51, %v1510_v58  ;;  %v1346_v52 = vadd.f32 1.0, %v2993_v2 }
 0x2ed   : > { %v1282_v26 = vsel %vm2968_vm6, %v1279_v61, %v1276_v55  ;;  %v1291_v12 = vsel %vm3001_vm9, %v1288_v15, %v1285_v27  ;;  %v1298_v44 = vand.u32 2147483647, %v2933_v22  ;;  %v1328_v45 = vadd.f32 1.0, %v2999_v47 }
 0x2ee   : > { %v2055_v4 = vpop.eup %2054  ;;  %v1377_v32 = vadd.f32 %v1376_v24, %v1361_v40  ;;  %v1305_v14 = vadd.f32 1.0, %v1304_v30  ;;  %v1126_v5 = vmul.f32 %v2599_v1, %v2803_v29  ;;  %1512 = vadd.xlane.f32.xlu1 %v1511_v9  ;;  %2064 = vlog2.f32 %v1346_v52 }
 0x2ef   : > { %v2057_v17 = vpop.eup %2056  ;;  %v1141_v61 = vsub.f32 %v1109_v36, %v2828_v57  ;;  %v1307_v59 = vand.u32 2147483647, %v2913_v28  ;;  %v1313_v56 = vmul.f32 -0.5, %v2945_v8  ;;  %2066 = vlog2.f32 %v1328_v45 }
 0x2f0   : > { %v1362_v25 = vadd.f32 %v1282_v26, %v2795_v23  ;;  %v1363_v48 = vadd.f32 %v1291_v12, %v2888_v46  ;;  %v1294_v35 = vmul.f32 0.6931472, %v2057_v17  ;;  %v1297_v34 = vmul.f32 %v2933_v22, %v1296_v0 }
 0x2f1   : > { %v1303_v1 = vmul.f32 0.6931472, %v2055_v4  ;;  %v1140_v13 = vsub.f32 %v1108_v33, %v1124_v53  ;;  %vm1299_vm10 = vcmp.lt.f32.partialorder %v1298_v44, 0.0004427343  ;;  %v1322_v60 = vmul.f32 -0.5, %v2985_v3 }
 0x2f2   : > { %v1306_v38 = vmul.f32 %v2913_v28, %v1305_v14  ;;  %v1378_v36 = vadd.f32 %v1377_v32, %v1362_v25  ;;  %v1142_v57 = vsub.f32 %v1110_v41, %v1126_v5  ;;  %v1300_v11 = vsel %vm1299_vm10, %v1297_v34, %v1294_v35 }
 0x2f3   : > { %v2059_v18 = vpop.eup %2058  ;;  %v1364_v40 = vadd.f32 %v1300_v11, %v1140_v13  ;;  %v1111_v23 = vmax.f32 %v2882_v54, 0.0  ;;  %v1127_v46 = vmul.f32 %v2617_v21, %v2882_v54  ;;  %v1314_v22 = vadd.f32 1.0, %v1313_v56 }
 0x2f4   : > { %vm3029_vm11 = vcmp.lt.f32.partialorder %v1307_v59, 0.0004427343  ;;  %v1379_v43 = vadd.f32 %v1378_v36, %v1363_v48  ;;  %v1316_v28 = vand.u32 2147483647, %v2945_v8  ;;  %v1340_v33 = vmul.f32 -0.5, %v2960_v16 }
 0x2f5   : > { %v1309_v29 = vsel %vm3029_vm11, %v1306_v38, %v1303_v1  ;;  %v1312_v41 = vmul.f32 0.6931472, %v2059_v18  ;;  %v1323_v20 = vadd.f32 1.0, %v1322_v60  ;;  %v1331_v31 = vmul.f32 -0.5, %v2999_v47 }
 0x2f6   : > { %v1113_v7 = vmax.f32 %v2856_v10, 0.0  ;;  %v1129_v21 = vmul.f32 %v2631_v39, %v2856_v10  ;;  %v1325_v54 = vand.u32 2147483647, %v2985_v3  ;;  %v1380_v55 = vadd.f32 %v1379_v43, %v1364_v40 }
 0x2f7   : > { %v2061_v27 = vpop.eup %2060  ;;  %v1143_v63 = vsub.f32 %v1111_v23, %v1127_v46  ;;  %v1112_v62 = vmax.f32 %v2902_v6, 0.0  ;;  %v1315_v24 = vmul.f32 %v2945_v8, %v1314_v22  ;;  %v1349_v30 = vmul.f32 -0.5, %v2993_v2 }
 0x2f8   : > { %v2063_v58 = vpop.eup %2062  ;;  %v1365_v15 = vadd.f32 %v1309_v29, %v1141_v61  ;;  %v1128_v53 = vmul.f32 %v2613_v19, %v2902_v6  ;;  %vm3047_vm12 = vcmp.lt.f32.partialorder %v1316_v28, 0.0004427343  ;;  %v1341_v39 = vadd.f32 1.0, %v1340_v33 }
 0x2f9   : > { %v1318_v10 = vsel %vm3047_vm12, %v1315_v24, %v1312_v41  ;;  %v1321_v42 = vmul.f32 0.6931472, %v2063_v58  ;;  %v1324_v0 = vmul.f32 %v2985_v3, %v1323_v20  ;;  %v1332_v9 = vadd.f32 1.0, %v1331_v31 }
 0x2fa   : > { %vm1326_vm13 = vcmp.lt.f32.partialorder %v1325_v54, 0.0004427343  ;;  %v1334_v8 = vand.u32 2147483647, %v2999_v47  ;;  %v1343_v52 = vand.u32 2147483647, %v2960_v16  ;;  %v1381_v26 = vadd.f32 %v1380_v55, %v1365_v15 }
 0x2fb   : > { %v2065_v12 = vpop.eup %2064  ;;  %v1114_v19 = vmax.f32 %v2893_v49, 0.0  ;;  %v1327_v6 = vsel %vm1326_vm13, %v1324_v0, %v1321_v42  ;;  %v1339_v44 = vmul.f32 0.6931472, %v2061_v27  ;;  %v1350_v45 = vadd.f32 1.0, %v1349_v30 }
 0x2fc   : > { %v2067_v4 = vpop.eup %2066  ;;  %v1130_v32 = vmul.f32 %v2627_v37, %v2893_v49  ;;  %v1352_v14 = vand.u32 2147483647, %v2993_v2  ;;  %v1366_v3 = vadd.f32 %v1318_v10, %v1142_v57  ;;  %v1367_v5 = vadd.f32 %v1327_v6, %v1143_v63 }
 0x2fd   : > { %v1330_v17 = vmul.f32 0.6931472, %v2067_v4  ;;  %v1333_v61 = vmul.f32 %v2999_v47, %v1332_v9  ;;  %v1342_v59 = vmul.f32 %v2960_v16, %v1341_v39  ;;  %v1348_v56 = vmul.f32 0.6931472, %v2065_v12 }
 0x2fe   : > { %v1144_v25 = vsub.f32 %v1112_v62, %v1128_v53  ;;  %vm1335_vm14 = vcmp.lt.f32.partialorder %v1334_v8, 0.0004427343  ;;  %vm1344_vm15 = vcmp.lt.f32.partialorder %v1343_v52, 0.0004427343  ;;  %v1382_v48 = vadd.f32 %v1381_v26, %v1366_v3 }
 0x2ff   : > { %v1336_v35 = vsel %vm1335_vm14, %v1333_v61, %v1330_v17  ;;  %v1345_v34 = vsel %vm1344_vm15, %v1342_v59, %v1339_v44  ;;  %v1351_v1 = vmul.f32 %v2993_v2, %v1350_v45  ;;  %v1145_v13 = vsub.f32 %v1113_v7, %v1129_v21  ;;  %v1371_v7 = vld [vmem:[#allocation2] sm:$0x1]  ;;  %v1448_v21 = vld [vmem:[#allocation3] sm:$0x1] }
 0x300   : > { %vm1353_vm0 = vcmp.lt.f32.partialorder %v1352_v14, 0.0004427343  ;;  %v1368_v37 = vadd.f32 %v1336_v35, %v1144_v25  ;;  %v1383_v49 = vadd.f32 %v1382_v48, %v1367_v5  ;;  %v1146_v38 = vsub.f32 %v1114_v19, %v1130_v32 }
 0x301   : > { %v1354_v60 = vsel %vm1353_vm0, %v1351_v1, %v1348_v56  ;;  %v1369_v36 = vadd.f32 %v1345_v34, %v1145_v13  ;;  %vm1398_vm1 = vcmask 0  }
 0x302   : > { %v1384_v57 = vadd.f32 %v1383_v49, %v1368_v37  ;;  %v1370_v47 = vadd.f32 %v1354_v60, %v1146_v38 }
 0x304   : > { %v1385_v11 = vadd.f32 %v1384_v57, %v1369_v36 }
 0x306   : > { %v1386_v16 = vadd.f32 %v1385_v11, %v1370_v47 }
 0x308   : > { %1387 = vadd.xlane.f32.xlu0 %v1386_v16 }
 0x377   : > { %v1513_v18 = vpop.xlane.xlu1 %1512 }
 0x378   : > { %v1514_v40 = vrot.slane %v1513_v18, 4 }
 0x37a   : > { %v1515_v23 = vadd.f32 %v1514_v40, %v1513_v18 }
 0x37c   : > { %v1516_v46 = vrot.slane %v1515_v23, 2 }
 0x37e   : > { %v1517_v2 = vadd.f32 %v1516_v46, %v1515_v23 }
 0x380   : > { %v1518_v29 = vrot.slane %v1517_v2, 1 }
 0x382   : > { %v1519_v31 = vadd.f32 %v1518_v29, %v1517_v2 }
 0x391   : > { %v1388_v22 = vpop.xlane.xlu0 %1387 }
 0x392   : > { %v1389_v50 = vrot.slane %v1388_v22, 4 }
 0x394   : > { %v1390_v43 = vadd.f32 %v1389_v50, %v1388_v22 }
 0x396   : > { %v1391_v28 = vrot.slane %v1390_v43, 2 }
 0x398   : > { %v1392_v33 = vadd.f32 %v1391_v28, %v1390_v43 }
 0x39a   : > { %v1393_v41 = vrot.slane %v1392_v33, 1 }
 0x39c   : > { %v1394_v20 = vadd.f32 %v1393_v41, %v1392_v33 }
 0x39e   : > { %1894 = vpush %v1394_v20 }
 0x39f   : > { %1896 = vpush %v1519_v31 }
 0x3cf   : > { %s1895_s4 = spop %1894 }
 0x3d0   : > { %v1396_v54 = vstv %s1895_s4  ;;  %s1897_s26 = spop %1896  ;;  %1527 = sbr.rel (%p1775_p2) target bundleno = 1122 (0x462), region = 76 }
 0x3d1   : > { %v1397_v55 = vadd.f32 %v1396_v54, %v1371_v7  ;;  %v1521_v27 = vstv %s1897_s26 }
 0x3d2   : > { %v1522_v63 = vadd.f32 %v1521_v27, %v1448_v21 }
 0x3d3   : > { %1399 = vst.msk [vmem:[#allocation2] sm:$0x1] %vm1398_vm1, %v1397_v55 }
 0x3d4   : > { %1523 = vst.msk [vmem:[#allocation3] sm:$0x1] %vm1398_vm1, %v1522_v63 }
 0x3d5   : > { %v2264_v30 = vmov 0   ;;  %v1528_v53 = vlaneseq }
 0x3d6   : > { %2068 = vset.pattern.permute.xlu0 %v2264_v30 }
 0x3d7   : > { %v1542_v51 = vshrl.u32 %v1528_v53, 7  ;;  %v1529_v10 = vand.u32 127, %v1528_v53 }
 0x3d9   : > { %v1543_v39 = vsub.s32 0, %v1542_v51  ;;  %vm1535_vm2 = vcmp.eq.s32.totalorder %v1529_v10, 1  ;;  %vm1534_vm3 = vcmp.eq.s32.totalorder %v1529_v10, 0 }
 0x3da   : > { %v1530_v24 = vld [vmem:[#allocation2] sm:$0x1] }
 0x3db   : > { %v1532_v62 = vld [vmem:[#allocation3] sm:$0x1]  ;;  %v1531_v15 = vmul.f32 1.5258789e-05, %v1530_v24 }
 0x3dc   : > { %v1533_v58 = vmul.f32 1.5258789e-05, %v1532_v62 }
 0x3de   : > { %1538 = vperm.xlu0 %2068, %v1533_v58  }
 0x3e2   : > { %1548 = vperm.xlu0 %2068, %v1531_v15  }
 0x459   : > { %v1539_v42 = vpop.permute.xlu0 %1538 }
 0x45a   : > { %v1544_v0 = vrot.slane %v1539_v42, %v1543_v39 }
 0x45c   : > { %v1545_v52 = vsel %vm1535_vm2, %v1544_v0, 0.0 }
 0x45d   : > { %v1549_v9 = vpop.permute.xlu0 %1548 }
 0x45e   : > { %v1554_v8 = vrot.slane %v1549_v9, %v1543_v39 }
 0x460   : > { %v1555_v26 = vsel %vm1534_vm3, %v1554_v8, %v1545_v52 }
 0x461   : > { %1556 = vst [vmem:[#allocation12] sm:$0x1] %v1555_v26 }
 0x462 PF: > { %p1933_p3 = scmp.eq.s32.totalorder %s2330_s9, 3  ;;  %s2265_s18 = smov [#allocation12]  }
 0x463   : > { %s1564_s20 = sshll.u32 %s2265_s18, 4  ;;  %s1565_s20 = int_to_ptr.vmem [resolvable:$true] %s1564_s20 }
 0x464   : > { %s2177_s21 = scalar_lea.vmem %s1565_s20, 16  ;;  %s2183_s15 = scalar_lea.vmem %s1565_s20, 32 }
 0x465   : > { %p2178_p10 = scmp.ne.s32.totalorder %s1565_s20, %s2177_s21  ;;  %p2184_p11 = scmp.lt.s32.totalorder %s1565_s20, %s1565_s20 }
 0x466   : > { %p2185_p1 = scmp.lt.s32.totalorder %s2183_s15, %s2177_s21 }
 0x467   : > { %p2179_p13 = pnand %p2178_p10, %p1933_p3 }
 0x468   : > { %p2186_p7 = por %p2185_p1, %p2184_p11 }
 0x469   : > { %p2180_p5 = pneg %p2179_p13 }
 0x46b   : > { %p2187_p6 = pnand %p2186_p7, %p2180_p5 }
 0x46d   : > { %2190 = shalt.err (!%p2187_p6)
}
 0x46e   : > { %1911 = dma.vmem_to_hbm [thread:$0]  (%p1933_p3), %s1565_s20, 16, %s3097_s8, [#allocation6]  }
 0x46f   : > { %2234 = dma.done.wait (%p1933_p3), [#allocation6], 16  }
 0x470   : > { %2236 = vsyncadd (%p1933_p3), [#allocation6], 4294967280 }
 0x471 PF: > { %p23_p8 = scmp.ge.s32.totalorder %s2374_s25, 6   ;;  %s3136_s27 = smov %s2243_s28 }
 0x472   : > { %s3137_s28 = smov %s2247_s29  ;;  %s3138_s29 = smov %s2385_s13 }
 0x473   : > { %s3139_s30 = smov %s2374_s25  ;;  %25 = sbr.rel (!%p23_p8) target bundleno = 10 (0xa), region = 124 }
 0x478   :  { %1577 = vsyncpa [#allocation5], 1 }
 0x479   :  { %1579 = vsyncpa [#allocation5 + $0x1], 1 }
 0x47a   :  { %1580 = vsyncpa [#allocation8], 1 }
 0x47b   :  { %1582 = vsyncpa [#allocation8 + $0x1], 1 }
 0x47c   :  { %1583 = vsyncpa [#allocation11], 1 }
 0x47d   :  { %1584 = vsyncpa [#allocation6], 1 }
 0x47e   :  { %1586 = vsyncpa [#allocation6 + $0x1], 1 }

</bundles_post_ra>
